<compile_context>
chip_gen: v7x
topology: tpu7x:2x2x1
jax: 0.10.0
libtpu: 0.0.40
codegen_flags: <defaults>
</compile_context>

<pallas_src>
import functools

import jax
import jax.numpy as jnp
from jax.experimental import pallas as pl
from jax.experimental.pallas import tpu as pltpu

LANE = 128


# ----------------------------- helpers ------------------------------------- #

def _round_up(n, m):
    return ((n + m - 1) // m) * m


def _apply_act(x, act):
    if act == "relu":
        return jnp.maximum(x, 0.0)
    if act == "tanh":
        return jnp.tanh(x)
    if act == "sigmoid":
        return jax.nn.sigmoid(x)
    return x  # 'id' / None


# ----------------------------- fused Pallas kernel -------------------------- #

def fused_vcnet_kernel(*refs, n_density, density_acts, q_acts, d, out_pad):
    """Whole VcnetAtt forward for one batch tile (everything VMEM resident).

    refs layout (inputs, then output):
      x:(Bt,in0), t:(Bt,1),
      [dw_i:(prev_pad, out_pad_i), db_i:(1, out_pad_i)] * n_density,
      emb_w_res:(1,d), emb_b:(1,d),
      aux_w:(d, (d+n_q)*out_pad),
      [w2_i:(feat_pad_i, d*out_pad)] * n_q,
      out:(Bt, out_pad)
    """
    it = iter(refs)
    x_ref = next(it)
    t_ref = next(it)

    h = x_ref[...]                               # (Bt, in0) f32
    t = t_ref[...]                               # (Bt, 1)   f32

    # hidden_features: plain Linear stack.  Outputs are lane-padded to 128
    # host-side; padded columns are neutralised by zero rows in the next weight.
    for li in range(n_density):
        w = next(it)[...]
        b = next(it)[...]
        z = jnp.dot(h.astype(w.dtype), w, preferred_element_type=jnp.float32) + b
        h = _apply_act(z, density_acts[li])

    # treat-embedding basis, once per forward ('+t' residual folded into emb_w).
    emb_w = next(it)[...]                        # (1, d)
    emb_b = next(it)[...]                        # (1, d)
    basis = t * emb_w + emb_b                    # (Bt, d)

    # One small MXU push produces (a) basis replicated across each 128-lane
    # output chunk ("bmask") and (b) every Att_FC bias term, so the Q loop
    # needs no single-lane extracts, no broadcasts and no concatenates.
    aux_w = next(it)[...]                        # (d, (d+n_q)*out_pad)
    aux = jnp.dot(basis, aux_w, preferred_element_type=jnp.float32)
    bmask = aux[:, :d * out_pad]                 # (Bt, d*out_pad)

    # Q: Att_FC blocks, output-side formulation:
    #   y   = feat @ W2                       (W2[i, k*out_pad+o] = W[i,o,k])
    #   out = bias_term + sum_k basis[:,k] * y[:, k-th 128-lane chunk]
    feat = h
    for li in range(len(q_acts)):
        w2 = next(it)[...]                       # (feat_pad, d*out_pad)
        y = jnp.dot(feat.astype(w2.dtype), w2, preferred_element_type=jnp.float32)
        prod = bmask * y                         # lane-aligned VPU multiply
        out = aux[:, (d + li) * out_pad:(d + li + 1) * out_pad]   # bias term
        for k in range(d):                       # lane-aligned chunk reduce
            out = out + prod[:, k * out_pad:(k + 1) * out_pad]
        feat = _apply_act(out, q_acts[li])

    o_ref = next(it)
    o_ref[...] = feat                            # lane-dense (Bt, out_pad) store


# ----------------------------- parameters ----------------------------------- #

def init_params(key, cfg_density, cfg, embed_size):
    """Synthetic params matching the __init__ shapes, plus kernel-ready
    (padded / restructured / bias-folded) versions built once on host."""
    d = embed_size - 1                           # treat_emb.emb_size
    params = {"density": [], "q": [], "d": d}
    n_keys = 2 * len(cfg_density) + 2 * len(cfg) + 2
    keys = iter(jax.random.split(key, n_keys))

    # hidden_features: nn.Linear layers, output columns padded to 128 lanes.
    dens_kernel = []
    cur_pad = cfg_density[0][0]                  # raw input width (x unpadded)
    for (ind, outd, isbias, act) in cfg_density:
        w = 0.1 * jax.random.uniform(next(keys), (ind, outd), jnp.float32)
        b = (0.1 * jax.random.uniform(next(keys), (outd,), jnp.float32)
             if isbias else jnp.zeros((outd,), jnp.float32))
        params["density"].append((w, b, act))
        outp = _round_up(outd, LANE)
        w_pad = jnp.zeros((cur_pad, outp), jnp.float32).at[:ind, :outd].set(w)
        b_pad = jnp.zeros((1, outp), jnp.float32).at[0, :outd].set(b)
        dens_kernel.append((w_pad, b_pad, act))
        cur_pad = outp

    # treat_emb (Embeddings(embed_size-1, act='id', initrange=0.2, res=1)).
    # TODO(synk): exact Embeddings definition not supplied; modelled as
    #             basis = t*We + Be + t, residual folded into the weight.
    emb_w = 0.2 * jax.random.uniform(next(keys), (1, d), jnp.float32)
    emb_b = 0.2 * jax.random.uniform(next(keys), (1, d), jnp.float32)
    params["emb_w"] = emb_w
    params["emb_b"] = emb_b
    params["emb_w_res"] = emb_w + 1.0            # fold '+ t' residual

    # Q: Att_FC blocks.  Synthetic weight stored as (d, ind, outd).
    # NOTE: a real torch Att_FC checkpoint stores weight as (ind, outd, d);
    #       it must be permuted to (d, ind, outd) (i.e. .permute(2, 0, 1))
    #       before reuse here — a plain reshape would be silently wrong.
    out_pad = max(_round_up(outd, LANE) for (_, outd, _, _) in cfg)
    q_kernel, bias_cols = [], []
    feat_pad = cur_pad
    for (ind, outd, isbias, act) in cfg:
        w = 0.05 * jax.random.uniform(next(keys), (d, ind, outd), jnp.float32)
        bias = (0.05 * jax.random.uniform(next(keys), (outd, d), jnp.float32)
                if isbias else jnp.zeros((outd, d), jnp.float32))
        params["q"].append({"w": w, "bias": bias, "act": act,
                            "isbias": bool(isbias)})
        w2 = jnp.transpose(w, (1, 0, 2))                       # (ind, d, outd)
        w2_pad = (jnp.zeros((feat_pad, d, out_pad), jnp.float32)
                  .at[:ind, :, :outd].set(w2)
                  .reshape(feat_pad, d * out_pad))
        q_kernel.append((w2_pad, act))
        biasT = jnp.zeros((d, out_pad), jnp.float32).at[:, :outd].set(bias.T)
        bias_cols.append(biasT)
        feat_pad = out_pad

    # aux = basis @ [selector | bias_0.T | bias_1.T | ...]  (built once, host).
    sel = jnp.kron(jnp.eye(d, dtype=jnp.float32),
                   jnp.ones((1, out_pad), jnp.float32))        # (d, d*out_pad)
    params["aux_w"] = jnp.concatenate([sel] + bias_cols, axis=1)

    params["dens_kernel"] = dens_kernel
    params["q_kernel"] = q_kernel
    params["out_pad"] = out_pad
    params["out_d"] = cfg[-1][1]
    return params


# ----------------------------- forward (Pallas) ------------------------------ #

def vcnet_att_forward(params, t, x, *, b_tile=512, mxu_dtype=jnp.float32):
    """Pallas-backed VcnetAtt forward.  Returns (g=None, Q).

    b_tile: batch tile size.  512 is a good generation-agnostic default; on
    v5e/v6e (128 MiB VMEM) it can be raised, on v7x (64 MiB) keep <= ~2048.
    mxu_dtype=jnp.bfloat16: cast weights/activations only at the MXU boundary
    (2x MXU rate + half VMEM traffic on v6e/v7x; elementwise stays f32).
    """
    x = x.astype(jnp.float32)
    B, in0 = x.shape
    d = params["d"]
    out_pad = params["out_pad"]
    out_d = params["out_d"]

    # batch tiling + zero padding to a whole number of tiles.
    B_TILE = b_tile if B >= b_tile else _round_up(max(B, 1), 8)
    B_pad = _round_up(B, B_TILE)
    t_col = t.reshape(B, 1).astype(jnp.float32)
    if B_pad != B:
        x = jnp.pad(x, ((0, B_pad - B), (0, 0)))
        t_col = jnp.pad(t_col, ((0, B_pad - B), (0, 0)))

    def full_spec(a):                      # weights: whole array, resident
        return pl.BlockSpec(a.shape, lambda i: (0, 0))

    inputs = [x, t_col]
    in_specs = [pl.BlockSpec((B_TILE, in0), lambda i: (i, 0)),
                pl.BlockSpec((B_TILE, 1), lambda i: (i, 0))]

    density_acts = []
    for (w_pad_, b_pad_, act) in params["dens_kernel"]:
        w_c = w_pad_.astype(mxu_dtype)
        inputs += [w_c, b_pad_]
        in_specs += [full_spec(w_c), full_spec(b_pad_)]
        density_acts.append(act)

    for a in (params["emb_w_res"], params["emb_b"], params["aux_w"]):
        inputs.append(a)
        in_specs.append(full_spec(a))

    q_acts = []
    for (w2_pad_, act) in params["q_kernel"]:
        w2_c = w2_pad_.astype(mxu_dtype)
        inputs.append(w2_c)
        in_specs.append(full_spec(w2_c))
        q_acts.append(act)

    kernel = functools.partial(
        fused_vcnet_kernel,
        n_density=len(density_acts),
        density_acts=tuple(density_acts),
        q_acts=tuple(q_acts),
        d=d, out_pad=out_pad)

    # advisory cost estimate
    flops = 0
    for (w_pad_, _, _) in params["dens_kernel"]:
        flops += 2 * B_pad * w_pad_.shape[0] * w_pad_.shape[1]
    flops += 2 * B_pad * d * params["aux_w"].shape[1]
    for (w2_pad_, _) in params["q_kernel"]:
        flops += 2 * B_pad * w2_pad_.shape[0] * w2_pad_.shape[1]
        flops += 2 * B_pad * d * out_pad
    transc = 0
    for (w_pad_, _, act) in params["dens_kernel"]:
        if act in ("tanh", "sigmoid"):
            transc += B_pad * w_pad_.shape[1]
    for (_, act) in params["q_kernel"]:
        if act in ("tanh", "sigmoid"):
            transc += B_pad * out_pad
    bytes_accessed = sum(int(a.size) * a.dtype.itemsize for a in inputs)
    bytes_accessed += B_pad * out_pad * 4

    q_full = pl.pallas_call(
        kernel,
        grid=(B_pad // B_TILE,),
        out_shape=jax.ShapeDtypeStruct((B_pad, out_pad), jnp.float32),
        in_specs=in_specs,
        out_specs=pl.BlockSpec((B_TILE, out_pad), lambda i: (i, 0)),
        compiler_params=pltpu.CompilerParams(
            dimension_semantics=("parallel",)),
        cost_estimate=pl.CostEstimate(
            flops=int(flops), transcendentals=int(transc),
            bytes_accessed=int(bytes_accessed)),
    )(*inputs)

    return None, q_full[:B, :out_d]


# ----------------------------- pure-JAX reference ---------------------------- #

def reference_forward(params, t, x):
    """Reference using the RAW (unpadded, unfolded) parameters."""
    h = x.astype(jnp.float32)
    for (w, b, act) in params["density"]:
        h = _apply_act(h @ w + b, act)
    t_col = t.reshape(-1, 1).astype(jnp.float32)
    basis = t_col * params["emb_w"] + params["emb_b"] + t_col
    feat = h
    for q in params["q"]:
        out = jnp.einsum("bi,dio,bd->bo", feat, q["w"], basis)
        if q["isbias"]:
            out = out + basis @ q["bias"].T
        feat = _apply_act(out, q["act"])
    return None, feat


# ----------------------------- main ------------------------------------------ #

if __name__ == "__main__":
    # Small config consistent with the module's structure:
    #   cfg_density: [(ind, outd, isbias, act), ...]   -> hidden_features
    #   cfg:         [(ind, outd, isbias, act), ...]   -> Q (Att_FC blocks)
    embed_size = 10                  # -> treat_emb dim d = 9
    cfg_density = [(6, 32, 1, "relu"), (32, 32, 1, "relu")]
    cfg = [(32, 32, 1, "relu"), (32, 1, 1, "id")]
    batch = 21                       # deliberately not a tile multiple

    key = jax.random.PRNGKey(0)
    k_param, k_x, k_t = jax.random.split(key, 3)

    params = init_params(k_param, cfg_density, cfg, embed_size)
    x = jax.random.normal(k_x, (batch, cfg_density[0][0]), jnp.float32)
    t = jax.random.uniform(k_t, (batch,), jnp.float32)

    _, Q_ref = reference_forward(params, t, x)
    Q_ref = jax.block_until_ready(Q_ref)

    # f32 MXU path (tight check); b_tile kept tiny here only to exercise the
    # batch grid / padding path at demo size (use 512+ in production).
    g, Q = vcnet_att_forward(params, t, x, b_tile=8)
    Q = jax.block_until_ready(Q)
    assert Q.shape == (batch, cfg[-1][1]), Q.shape
    assert jnp.allclose(Q, Q_ref, rtol=1e-4, atol=1e-5), (
        f"max abs err {float(jnp.max(jnp.abs(Q - Q_ref)))}")

    # bf16-at-the-MXU-boundary path (v6e/v7x optimization), loose tolerance.
    _, Q_bf16 = vcnet_att_forward(params, t, x, b_tile=8,
                                  mxu_dtype=jnp.bfloat16)
    Q_bf16 = jax.block_until_ready(Q_bf16)
    assert jnp.allclose(Q_bf16, Q_ref, rtol=5e-2, atol=5e-2), (
        f"bf16 max abs err {float(jnp.max(jnp.abs(Q_bf16 - Q_ref)))}")

    print("KERNEL_OK")
</pallas_src>

<mosaic_0001>
module attributes {stable_mosaic.version = 11 : i64} {
  func.func @fused_vcnet_kernel(%arg0: i32, %arg1: memref<8x6xf32, #tpu.memory_space<vmem>>, %arg2: memref<8x1xf32, #tpu.memory_space<vmem>>, %arg3: memref<6x128xf32, #tpu.memory_space<vmem>>, %arg4: memref<1x128xf32, #tpu.memory_space<vmem>>, %arg5: memref<128x128xf32, #tpu.memory_space<vmem>>, %arg6: memref<1x128xf32, #tpu.memory_space<vmem>>, %arg7: memref<1x9xf32, #tpu.memory_space<vmem>>, %arg8: memref<1x9xf32, #tpu.memory_space<vmem>>, %arg9: memref<9x1408xf32, #tpu.memory_space<vmem>>, %arg10: memref<128x1152xf32, #tpu.memory_space<vmem>>, %arg11: memref<128x1152xf32, #tpu.memory_space<vmem>>, %arg12: memref<8x128xf32, #tpu.memory_space<vmem>>) attributes {dimension_semantics = [#tpu.dimension_semantics<parallel>], iteration_bounds = array<i64: 3>, scalar_prefetch = 0 : i64, scratch_operands = 0 : i64, tpu.core_type = #tpu.core_type<tc>, window_params = [{transform_indices = @transform_0, window_bounds = array<i64: 8, 6>}, {transform_indices = @transform_1, window_bounds = array<i64: 8, 1>}, {pipeline_mode = #tpu.pipeline_mode<synchronous>, transform_indices = @transform_2, window_bounds = array<i64: 6, 128>}, {pipeline_mode = #tpu.pipeline_mode<synchronous>, transform_indices = @transform_3, window_bounds = array<i64: 1, 128>}, {pipeline_mode = #tpu.pipeline_mode<synchronous>, transform_indices = @transform_4, window_bounds = array<i64: 128, 128>}, {pipeline_mode = #tpu.pipeline_mode<synchronous>, transform_indices = @transform_5, window_bounds = array<i64: 1, 128>}, {pipeline_mode = #tpu.pipeline_mode<synchronous>, transform_indices = @transform_6, window_bounds = array<i64: 1, 9>}, {pipeline_mode = #tpu.pipeline_mode<synchronous>, transform_indices = @transform_7, window_bounds = array<i64: 1, 9>}, {pipeline_mode = #tpu.pipeline_mode<synchronous>, transform_indices = @transform_8, window_bounds = array<i64: 9, 1408>}, {pipeline_mode = #tpu.pipeline_mode<synchronous>, transform_indices = @transform_9, window_bounds = array<i64: 128, 1152>}, {pipeline_mode = #tpu.pipeline_mode<synchronous>, transform_indices = @transform_10, window_bounds = array<i64: 128, 1152>}, {transform_indices = @transform_11, window_bounds = array<i64: 8, 128>}]} {
    %c0 = arith.constant 0 : index
    %c0_0 = arith.constant 0 : index
    %0 = vector.load %arg1[%c0, %c0_0] : memref<8x6xf32, #tpu.memory_space<vmem>>, vector<8x6xf32>
    %c0_1 = arith.constant 0 : index
    %c0_2 = arith.constant 0 : index
    %1 = vector.load %arg2[%c0_1, %c0_2] : memref<8x1xf32, #tpu.memory_space<vmem>>, vector<8x1xf32>
    %c0_3 = arith.constant 0 : index
    %c0_4 = arith.constant 0 : index
    %2 = vector.load %arg3[%c0_3, %c0_4] : memref<6x128xf32, #tpu.memory_space<vmem>>, vector<6x128xf32>
    %c0_5 = arith.constant 0 : index
    %c0_6 = arith.constant 0 : index
    %3 = vector.load %arg4[%c0_5, %c0_6] : memref<1x128xf32, #tpu.memory_space<vmem>>, vector<1x128xf32>
    %cst = arith.constant dense<0.000000e+00> : vector<8x128xf32>
    %4 = tpu.matmul %0, %2, %cst {dimension_numbers = #tpu.dot_dimension_numbers<[1], [0], [0], [1], [0, 0, 1, 1], [], []>} : vector<8x6xf32>, vector<6x128xf32>, vector<8x128xf32> -> vector<8x128xf32>
    %5 = vector.broadcast %3 : vector<1x128xf32> to vector<8x128xf32>
    %6 = arith.addf %4, %5 : vector<8x128xf32>
    %cst_7 = arith.constant 0.000000e+00 : f32
    %7 = vector.broadcast %cst_7 : f32 to vector<8x128xf32>
    %8 = arith.maximumf %6, %7 : vector<8x128xf32>
    %c0_8 = arith.constant 0 : index
    %c0_9 = arith.constant 0 : index
    %9 = vector.load %arg5[%c0_8, %c0_9] : memref<128x128xf32, #tpu.memory_space<vmem>>, vector<128x128xf32>
    %c0_10 = arith.constant 0 : index
    %c0_11 = arith.constant 0 : index
    %10 = vector.load %arg6[%c0_10, %c0_11] : memref<1x128xf32, #tpu.memory_space<vmem>>, vector<1x128xf32>
    %cst_12 = arith.constant dense<0.000000e+00> : vector<8x128xf32>
    %11 = tpu.matmul %8, %9, %cst_12 {dimension_numbers = #tpu.dot_dimension_numbers<[1], [0], [0], [1], [0, 0, 1, 1], [], []>} : vector<8x128xf32>, vector<128x128xf32>, vector<8x128xf32> -> vector<8x128xf32>
    %12 = vector.broadcast %10 : vector<1x128xf32> to vector<8x128xf32>
    %13 = arith.addf %11, %12 : vector<8x128xf32>
    %cst_13 = arith.constant 0.000000e+00 : f32
    %14 = vector.broadcast %cst_13 : f32 to vector<8x128xf32>
    %15 = arith.maximumf %13, %14 : vector<8x128xf32>
    %c0_14 = arith.constant 0 : index
    %c0_15 = arith.constant 0 : index
    %16 = vector.load %arg7[%c0_14, %c0_15] : memref<1x9xf32, #tpu.memory_space<vmem>>, vector<1x9xf32>
    %c0_16 = arith.constant 0 : index
    %c0_17 = arith.constant 0 : index
    %17 = vector.load %arg8[%c0_16, %c0_17] : memref<1x9xf32, #tpu.memory_space<vmem>>, vector<1x9xf32>
    %18 = vector.broadcast %1 : vector<8x1xf32> to vector<8x9xf32>
    %19 = vector.broadcast %16 : vector<1x9xf32> to vector<8x9xf32>
    %20 = arith.mulf %18, %19 : vector<8x9xf32>
    %21 = vector.broadcast %17 : vector<1x9xf32> to vector<8x9xf32>
    %22 = arith.addf %20, %21 : vector<8x9xf32>
    %c0_18 = arith.constant 0 : index
    %c0_19 = arith.constant 0 : index
    %23 = vector.load %arg9[%c0_18, %c0_19] : memref<9x1408xf32, #tpu.memory_space<vmem>>, vector<9x1408xf32>
    %cst_20 = arith.constant dense<0.000000e+00> : vector<8x1408xf32>
    %24 = tpu.matmul %22, %23, %cst_20 {dimension_numbers = #tpu.dot_dimension_numbers<[1], [0], [0], [1], [0, 0, 1, 1], [], []>} : vector<8x9xf32>, vector<9x1408xf32>, vector<8x1408xf32> -> vector<8x1408xf32>
    %25 = vector.extract_strided_slice %24 {offsets = [0, 0], sizes = [8, 1152], strides = [1, 1]} : vector<8x1408xf32> to vector<8x1152xf32>
    %c0_21 = arith.constant 0 : index
    %c0_22 = arith.constant 0 : index
    %26 = vector.load %arg10[%c0_21, %c0_22] : memref<128x1152xf32, #tpu.memory_space<vmem>>, vector<128x1152xf32>
    %cst_23 = arith.constant dense<0.000000e+00> : vector<8x1152xf32>
    %27 = tpu.matmul %15, %26, %cst_23 {dimension_numbers = #tpu.dot_dimension_numbers<[1], [0], [0], [1], [0, 0, 1, 1], [], []>} : vector<8x128xf32>, vector<128x1152xf32>, vector<8x1152xf32> -> vector<8x1152xf32>
    %28 = arith.mulf %25, %27 : vector<8x1152xf32>
    %29 = vector.extract_strided_slice %24 {offsets = [0, 1152], sizes = [8, 128], strides = [1, 1]} : vector<8x1408xf32> to vector<8x128xf32>
    %30 = vector.extract_strided_slice %28 {offsets = [0, 0], sizes = [8, 128], strides = [1, 1]} : vector<8x1152xf32> to vector<8x128xf32>
    %31 = arith.addf %29, %30 : vector<8x128xf32>
    %32 = vector.extract_strided_slice %28 {offsets = [0, 128], sizes = [8, 128], strides = [1, 1]} : vector<8x1152xf32> to vector<8x128xf32>
    %33 = arith.addf %31, %32 : vector<8x128xf32>
    %34 = vector.extract_strided_slice %28 {offsets = [0, 256], sizes = [8, 128], strides = [1, 1]} : vector<8x1152xf32> to vector<8x128xf32>
    %35 = arith.addf %33, %34 : vector<8x128xf32>
    %36 = vector.extract_strided_slice %28 {offsets = [0, 384], sizes = [8, 128], strides = [1, 1]} : vector<8x1152xf32> to vector<8x128xf32>
    %37 = arith.addf %35, %36 : vector<8x128xf32>
    %38 = vector.extract_strided_slice %28 {offsets = [0, 512], sizes = [8, 128], strides = [1, 1]} : vector<8x1152xf32> to vector<8x128xf32>
    %39 = arith.addf %37, %38 : vector<8x128xf32>
    %40 = vector.extract_strided_slice %28 {offsets = [0, 640], sizes = [8, 128], strides = [1, 1]} : vector<8x1152xf32> to vector<8x128xf32>
    %41 = arith.addf %39, %40 : vector<8x128xf32>
    %42 = vector.extract_strided_slice %28 {offsets = [0, 768], sizes = [8, 128], strides = [1, 1]} : vector<8x1152xf32> to vector<8x128xf32>
    %43 = arith.addf %41, %42 : vector<8x128xf32>
    %44 = vector.extract_strided_slice %28 {offsets = [0, 896], sizes = [8, 128], strides = [1, 1]} : vector<8x1152xf32> to vector<8x128xf32>
    %45 = arith.addf %43, %44 : vector<8x128xf32>
    %46 = vector.extract_strided_slice %28 {offsets = [0, 1024], sizes = [8, 128], strides = [1, 1]} : vector<8x1152xf32> to vector<8x128xf32>
    %47 = arith.addf %45, %46 : vector<8x128xf32>
    %cst_24 = arith.constant 0.000000e+00 : f32
    %48 = vector.broadcast %cst_24 : f32 to vector<8x128xf32>
    %49 = arith.maximumf %47, %48 : vector<8x128xf32>
    %c0_25 = arith.constant 0 : index
    %c0_26 = arith.constant 0 : index
    %50 = vector.load %arg11[%c0_25, %c0_26] : memref<128x1152xf32, #tpu.memory_space<vmem>>, vector<128x1152xf32>
    %cst_27 = arith.constant dense<0.000000e+00> : vector<8x1152xf32>
    %51 = tpu.matmul %49, %50, %cst_27 {dimension_numbers = #tpu.dot_dimension_numbers<[1], [0], [0], [1], [0, 0, 1, 1], [], []>} : vector<8x128xf32>, vector<128x1152xf32>, vector<8x1152xf32> -> vector<8x1152xf32>
    %52 = arith.mulf %25, %51 : vector<8x1152xf32>
    %53 = vector.extract_strided_slice %24 {offsets = [0, 1280], sizes = [8, 128], strides = [1, 1]} : vector<8x1408xf32> to vector<8x128xf32>
    %54 = vector.extract_strided_slice %52 {offsets = [0, 0], sizes = [8, 128], strides = [1, 1]} : vector<8x1152xf32> to vector<8x128xf32>
    %55 = arith.addf %53, %54 : vector<8x128xf32>
    %56 = vector.extract_strided_slice %52 {offsets = [0, 128], sizes = [8, 128], strides = [1, 1]} : vector<8x1152xf32> to vector<8x128xf32>
    %57 = arith.addf %55, %56 : vector<8x128xf32>
    %58 = vector.extract_strided_slice %52 {offsets = [0, 256], sizes = [8, 128], strides = [1, 1]} : vector<8x1152xf32> to vector<8x128xf32>
    %59 = arith.addf %57, %58 : vector<8x128xf32>
    %60 = vector.extract_strided_slice %52 {offsets = [0, 384], sizes = [8, 128], strides = [1, 1]} : vector<8x1152xf32> to vector<8x128xf32>
    %61 = arith.addf %59, %60 : vector<8x128xf32>
    %62 = vector.extract_strided_slice %52 {offsets = [0, 512], sizes = [8, 128], strides = [1, 1]} : vector<8x1152xf32> to vector<8x128xf32>
    %63 = arith.addf %61, %62 : vector<8x128xf32>
    %64 = vector.extract_strided_slice %52 {offsets = [0, 640], sizes = [8, 128], strides = [1, 1]} : vector<8x1152xf32> to vector<8x128xf32>
    %65 = arith.addf %63, %64 : vector<8x128xf32>
    %66 = vector.extract_strided_slice %52 {offsets = [0, 768], sizes = [8, 128], strides = [1, 1]} : vector<8x1152xf32> to vector<8x128xf32>
    %67 = arith.addf %65, %66 : vector<8x128xf32>
    %68 = vector.extract_strided_slice %52 {offsets = [0, 896], sizes = [8, 128], strides = [1, 1]} : vector<8x1152xf32> to vector<8x128xf32>
    %69 = arith.addf %67, %68 : vector<8x128xf32>
    %70 = vector.extract_strided_slice %52 {offsets = [0, 1024], sizes = [8, 128], strides = [1, 1]} : vector<8x1152xf32> to vector<8x128xf32>
    %71 = arith.addf %69, %70 : vector<8x128xf32>
    %c0_28 = arith.constant 0 : index
    %c0_29 = arith.constant 0 : index
    %72 = vector.load %arg12[%c0_28, %c0_29] : memref<8x128xf32, #tpu.memory_space<vmem>>, vector<8x128xf32>
    tpu.vector_store %arg12[%c0_28, %c0_29], %71 {strides = array<i32>} : memref<8x128xf32, #tpu.memory_space<vmem>>, vector<8x128xf32>,
    return
  }
  func.func @transform_0(%arg0: i32) -> (i32, i32) {
    %c0_i32 = arith.constant 0 : i32
    %c0_i32_0 = arith.constant 0 : i32
    return %arg0, %c0_i32 : i32, i32
  }
  func.func @transform_1(%arg0: i32) -> (i32, i32) {
    %c0_i32 = arith.constant 0 : i32
    %c0_i32_0 = arith.constant 0 : i32
    return %arg0, %c0_i32 : i32, i32
  }
  func.func @transform_2(%arg0: i32) -> (i32, i32) {
    %c0_i32 = arith.constant 0 : i32
    %c0_i32_0 = arith.constant 0 : i32
    %c0_i32_1 = arith.constant 0 : i32
    return %c0_i32, %c0_i32_0 : i32, i32
  }
  func.func @transform_3(%arg0: i32) -> (i32, i32) {
    %c0_i32 = arith.constant 0 : i32
    %c0_i32_0 = arith.constant 0 : i32
    %c0_i32_1 = arith.constant 0 : i32
    return %c0_i32, %c0_i32_0 : i32, i32
  }
  func.func @transform_4(%arg0: i32) -> (i32, i32) {
    %c0_i32 = arith.constant 0 : i32
    %c0_i32_0 = arith.constant 0 : i32
    %c0_i32_1 = arith.constant 0 : i32
    return %c0_i32, %c0_i32_0 : i32, i32
  }
  func.func @transform_5(%arg0: i32) -> (i32, i32) {
    %c0_i32 = arith.constant 0 : i32
    %c0_i32_0 = arith.constant 0 : i32
    %c0_i32_1 = arith.constant 0 : i32
    return %c0_i32, %c0_i32_0 : i32, i32
  }
  func.func @transform_6(%arg0: i32) -> (i32, i32) {
    %c0_i32 = arith.constant 0 : i32
    %c0_i32_0 = arith.constant 0 : i32
    %c0_i32_1 = arith.constant 0 : i32
    return %c0_i32, %c0_i32_0 : i32, i32
  }
  func.func @transform_7(%arg0: i32) -> (i32, i32) {
    %c0_i32 = arith.constant 0 : i32
    %c0_i32_0 = arith.constant 0 : i32
    %c0_i32_1 = arith.constant 0 : i32
    return %c0_i32, %c0_i32_0 : i32, i32
  }
  func.func @transform_8(%arg0: i32) -> (i32, i32) {
    %c0_i32 = arith.constant 0 : i32
    %c0_i32_0 = arith.constant 0 : i32
    %c0_i32_1 = arith.constant 0 : i32
    return %c0_i32, %c0_i32_0 : i32, i32
  }
  func.func @transform_9(%arg0: i32) -> (i32, i32) {
    %c0_i32 = arith.constant 0 : i32
    %c0_i32_0 = arith.constant 0 : i32
    %c0_i32_1 = arith.constant 0 : i32
    return %c0_i32, %c0_i32_0 : i32, i32
  }
  func.func @transform_10(%arg0: i32) -> (i32, i32) {
    %c0_i32 = arith.constant 0 : i32
    %c0_i32_0 = arith.constant 0 : i32
    %c0_i32_1 = arith.constant 0 : i32
    return %c0_i32, %c0_i32_0 : i32, i32
  }
  func.func @transform_11(%arg0: i32) -> (i32, i32) {
    %c0_i32 = arith.constant 0 : i32
    %c0_i32_0 = arith.constant 0 : i32
    return %arg0, %c0_i32 : i32, i32
  }
}

</mosaic_0001>

<bundles_post_ra>
// kernel: tpu_custom_call.1
= control target key start
LH: loop header
LB: loop body
LE: loop exit
PB: predicated region body
PF: predicated region fallthrough
CT: control target
= control target key end

     0   :  { %s3622_s0 = inlined_call_operand.vmem [shape: f32[24,6], index: 0, kind: input, shape index: {}]   ;;  %s3623_s1 = inlined_call_operand.vmem [shape: f32[24,1], index: 1, kind: input, shape index: {}]   ;;  %s3624_s2 = inlined_call_operand.vmem [shape: f32[6,128], index: 2, kind: input, shape index: {}]   ;;  %s3625_s3 = inlined_call_operand.vmem [shape: f32[1,128], index: 3, kind: input, shape index: {}]   ;;  %s3626_s4 = inlined_call_operand.hbm [shape: f32[128,128], index: 4, kind: input, shape index: {}]   ;;  %s3627_s5 = inlined_call_operand.vmem [shape: f32[1,128], index: 5, kind: input, shape index: {}]   ;;  %s3628_s6 = inlined_call_operand.vmem [shape: f32[1,9], index: 6, kind: input, shape index: {}]   ;;  %s3629_s7 = inlined_call_operand.vmem [shape: f32[1,9], index: 7, kind: input, shape index: {}]   ;;  %s3630_s8 = inlined_call_operand.hbm [shape: f32[9,1408], index: 8, kind: input, shape index: {}]   ;;  %s3631_s9 = inlined_call_operand.hbm [shape: f32[128,1152], index: 9, kind: input, shape index: {}]   ;;  %s3632_s10 = inlined_call_operand.hbm [shape: f32[128,1152], index: 10, kind: input, shape index: {}]   ;;  %s3633_s11 = inlined_call_operand.hbm [shape: f32[24,128], index: 11, kind: output, shape index: {}]  }
   0x1   :  { %3643 = sst [smem:[#allocation21_spill]] %s3630_s8 }
   0x2   :  { %16 = vsyncpa [#allocation3], 0 }
   0x3   :  { %17 = vsyncpa [#allocation6], 0 }
   0x4   :  { %18 = vsyncpa [#allocation9], 0 }
   0x5   :  { %19 = vsyncpa [#allocation4], 0 }
   0x6   :  { %21 = vsyncpa [#allocation4 + $0x1], 0  ;;  %s3240_s17 = smov 0   ;;  %s3242_s18 = smov 0  }
   0x7   :  { %s3244_s19 = smov 0   ;;  %s3246_s20 = smov 0  }
   0x8 LB: > { %3644 = sst [smem:[#allocation15_spill]] %s3150_s17  ;;  %s3261_s21 = sadd.s32 4294967295, %s3162_s20   ;;  %s3162_s20 = sphi %s3246_s20, %s3670_s20   ;;  %s3158_s19 = sphi %s3244_s19, %s3672_s19   ;;  %s3154_s18 = sphi %s3242_s18, %s3674_s18   ;;  %s3150_s17 = sphi %s3240_s17, %s3673_s17  }
   0x9   : > { %3645 = sst [smem:[#allocation16_spill]] %s3158_s19  ;;  %s2307_s22 = sadd.s32 4294967294, %s3162_s20  }
   0xa   : > { %3646 = sst [smem:[#allocation17_spill]] %s3162_s20  ;;  %s3265_s23 = sadd.s32 1, %s3162_s20  }
   0xb   : > { %3647 = sst [smem:[#allocation18_spill]] %s3265_s23  ;;  %s275_s24 = sadd.s32 1, %s3158_s19 }
   0xc   : > { %s272_s25 = ssub.s32 %s3162_s20, %s3265_s23  ;;  %p285_p0 = scmp.ne.s32.totalorder %s3158_s19, %s3154_s18 }
   0xd   : > { %p273_p1 = scmp.eq.s32.totalorder %s272_s25, 0  ;;  %p286_p2 = scmp.eq.s32.totalorder %s3261_s21, 2 }
   0xe   : > { %p291_p3 = scmp.ne.s32.totalorder %s3154_s18, %s3150_s17  ;;  %p292_p4 = scmp.eq.s32.totalorder %s2307_s22, 2 }
   0xf   : > { %s3276_s26 = scalar_select %p273_p1, %s3158_s19, %s275_s24  }
  0x10   : > { %p3278_p5 = por %p286_p2, %p285_p0  ;;  %p3282_p6 = por %p292_p4, %p291_p3 }
  0x11   : > { %3648 = sst [smem:[#allocation19_spill]] %s3276_s26  ;;  %p2308_p7 = scmp.ge.s32.totalorder %s3162_s20, 1 }
  0x12   : > { %s3649_s27 = scalar_select %p3278_p5, 1, 0 }
  0x13   : > { %s3650_s28 = scalar_select %p3282_p6, 1, 0 }
  0x14   : > { %p299_p8 = scmp.lt.s32.totalorder %s3162_s20, 4  ;;  %p3635_p9 = scmp.eq.s32.totalorder %s3261_s21, 0 }
  0x15   : > { %3651 = sst [smem:[#allocation20_spill]] %s3650_s28  ;;  %s3164_s30 = smov [#allocation5]  }
  0x16   : > { %p3289_p10 = pnand %p2308_p7, %p299_p8  ;;  %s339_s12 = sshll.u32 %s3164_s30, 4  ;;  %s340_s12 = int_to_ptr.vmem [resolvable:$true] %s339_s12 }
  0x17   : > { %s3165_s14 = smov [#allocation2]   ;;  %s3654_s8 = sld [smem:[#allocation21_spill]] }
  0x18   : > { %s3652_s29 = scalar_select %p3289_p10, 1, 0 }
  0x19   : > { %p2902_p11 = pneg %p3289_p10  ;;  %s317_s15 = sshll.u32 %s3165_s14, 4  ;;  %s3301_s15 = int_to_ptr.vmem [resolvable:$true] %s317_s15 }
  0x1b   : > { %p3297_p12 = pnand %p3635_p9, %p2902_p11 }
  0x1d   : > { %s2976_s24 = scalar_lea.hbm %s3654_s8, 2816  ;;  %p3311_p0 = pneg %p3297_p12 }
  0x1e   : > { %p2977_p13 = scmp.ne.s32.totalorder %s3654_s8, %s2976_s24  ;;  %p2983_p3 = scmp.lt.u32.totalorder %s2976_s24, %s3654_s8 }
  0x20   : > { %p2979_p1 = pnand %p3311_p0, %p2977_p13 }
  0x22   : > { %p2980_p2 = pneg %p2979_p1 }
  0x24   : > { %p2985_p4 = pnand %p2983_p3, %p2980_p2 }
  0x26   : > { %2988 = shalt.err (!%p2985_p4)
}
  0x27   : > { %s2989_s16 = scalar_lea.vmem %s340_s12, 2816  ;;  %p2997_p9 = scmp.lt.s32.totalorder %s340_s12, %s340_s12 }
  0x28   : > { %p2990_p7 = scmp.ne.s32.totalorder %s340_s12, %s2989_s16  ;;  %p2998_p6 = scmp.lt.s32.totalorder %s2989_s16, %s2989_s16 }
  0x2a   : > { %p2992_p8 = pnand %p2990_p7, %p3311_p0  ;;  %p2999_p5 = por %p2998_p6, %p2997_p9 }
  0x2c   : > { %p2993_p11 = pneg %p2992_p8 }
  0x2e   : > { %p3000_p10 = pnand %p2999_p5, %p2993_p11 }
  0x30   : > { %3003 = shalt.err (!%p3000_p10)
}
  0x31   : > { %s3166_s26 = smov 1408   ;;  %s3167_s22 = smov 88  }
  0x32   : > { %2908 = dma.hbm_to_vmem [thread:$0]  (!%p3297_p12), %s3654_s8, 2816, %s340_s12, [#allocation6], %s3166_s26, %s3166_s26, %s3167_s22  }
  0x33   : > { %s3004_s23 = scalar_lea.hbm %s3626_s4, 2048 }
  0x34   : > { %p3005_p13 = scmp.ne.s32.totalorder %s3626_s4, %s3004_s23  ;;  %p3011_p9 = scmp.lt.u32.totalorder %s3004_s23, %s3626_s4 }
  0x36   : > { %p3007_p5 = pnand %p3005_p13, %p3311_p0 }
  0x38   : > { %p3008_p6 = pneg %p3007_p5 }
  0x3a   : > { %p3013_p10 = pnand %p3011_p9, %p3008_p6 }
  0x3c   : > { %3016 = shalt.err (!%p3013_p10)
}
  0x3d   : > { %s3017_s12 = scalar_lea.vmem %s3301_s15, 2048  ;;  %p3025_p4 = scmp.lt.s32.totalorder %s3301_s15, %s3301_s15 }
  0x3e   : > { %p3018_p1 = scmp.ne.s32.totalorder %s3301_s15, %s3017_s12  ;;  %p3026_p7 = scmp.lt.s32.totalorder %s3017_s12, %s3017_s12 }
  0x40   : > { %p3020_p2 = pnand %p3018_p1, %p3311_p0  ;;  %p3027_p8 = por %p3026_p7, %p3025_p4 }
  0x42   : > { %p3021_p3 = pneg %p3020_p2 }
  0x44   : > { %p3028_p11 = pnand %p3027_p8, %p3021_p3 }
  0x46   : > { %3031 = shalt.err (!%p3028_p11)
}
  0x47   : > { %s3168_s17 = smov 128   ;;  %s3169_s20 = smov 8  }
  0x48   : > { %2905 = dma.hbm_to_vmem [thread:$0]  (!%p3297_p12), %s3626_s4, 2048, %s3301_s15, [#allocation3], %s3168_s17, %s3168_s17, %s3169_s20  }
  0x49   : > { %s3170_s26 = smov [#allocation7]   ;;  %s3032_s25 = scalar_lea.hbm %s3631_s9, 18432 }
  0x4a   : > { %s352_s22 = sshll.u32 %s3170_s26, 4  ;;  %p3033_p13 = scmp.ne.s32.totalorder %s3631_s9, %s3032_s25  ;;  %s353_s22 = int_to_ptr.vmem [resolvable:$true] %s352_s22 }
  0x4b   : > { %p3039_p9 = scmp.lt.u32.totalorder %s3032_s25, %s3631_s9 }
  0x4c   : > { %p3035_p5 = pnand %p3033_p13, %p3311_p0 }
  0x4e   : > { %p3036_p6 = pneg %p3035_p5 }
  0x50   : > { %p3041_p10 = pnand %p3039_p9, %p3036_p6 }
  0x52   : > { %3044 = shalt.err (!%p3041_p10)
}
  0x53   : > { %s3045_s15 = scalar_lea.vmem %s353_s22, 18432  ;;  %p3053_p4 = scmp.lt.s32.totalorder %s353_s22, %s353_s22 }
  0x54   : > { %p3046_p1 = scmp.ne.s32.totalorder %s353_s22, %s3045_s15  ;;  %p3054_p7 = scmp.lt.s32.totalorder %s3045_s15, %s3045_s15 }
  0x56   : > { %p3048_p2 = pnand %p3046_p1, %p3311_p0  ;;  %p3055_p8 = por %p3054_p7, %p3053_p4 }
  0x58   : > { %p3049_p3 = pneg %p3048_p2 }
  0x5a   : > { %p3056_p11 = pnand %p3055_p8, %p3049_p3 }
  0x5c   : > { %3059 = shalt.err (!%p3056_p11)
}
  0x5d   : > { %s3171_s17 = smov 1152   ;;  %s3172_s20 = smov 72  }
  0x5e   : > { %2911 = dma.hbm_to_vmem [thread:$0]  (!%p3297_p12), %s3631_s9, 18432, %s353_s22, [#allocation6], %s3171_s17, %s3171_s17, %s3172_s20  }
  0x5f   : > { %s3173_s28 = smov [#allocation8]   ;;  %s3060_s25 = scalar_lea.hbm %s3632_s10, 18432 }
  0x60   : > { %s365_s26 = sshll.u32 %s3173_s28, 4  ;;  %p3061_p13 = scmp.ne.s32.totalorder %s3632_s10, %s3060_s25  ;;  %s366_s26 = int_to_ptr.vmem [resolvable:$true] %s365_s26 }
  0x61   : > { %p3067_p9 = scmp.lt.u32.totalorder %s3060_s25, %s3632_s10 }
  0x62   : > { %p3063_p5 = pnand %p3061_p13, %p3311_p0 }
  0x64   : > { %p3064_p6 = pneg %p3063_p5 }
  0x66   : > { %p3069_p10 = pnand %p3067_p9, %p3064_p6 }
  0x68   : > { %3072 = shalt.err (!%p3069_p10)
}
  0x69   : > { %s3073_s22 = scalar_lea.vmem %s366_s26, 18432  ;;  %p3081_p4 = scmp.lt.s32.totalorder %s366_s26, %s366_s26 }
  0x6a   : > { %p3074_p1 = scmp.ne.s32.totalorder %s366_s26, %s3073_s22  ;;  %p3082_p7 = scmp.lt.s32.totalorder %s3073_s22, %s3073_s22 }
  0x6c   : > { %p3076_p2 = pnand %p3074_p1, %p3311_p0  ;;  %p3083_p8 = por %p3082_p7, %p3081_p4 }
  0x6e   : > { %p3077_p3 = pneg %p3076_p2 }
  0x70   : > { %p3084_p11 = pnand %p3083_p8, %p3077_p3 }
  0x72   : > { %3087 = shalt.err (!%p3084_p11)
}
  0x73   : > { %2914 = dma.hbm_to_vmem [thread:$0]  (!%p3297_p12), %s3632_s10, 18432, %s366_s26, [#allocation9], %s3171_s17, %s3171_s17, %s3172_s20  }
  0x74   : > { %p3656_p13 = scmp.ne.s32.totalorder %s3652_s29, 0 }
  0x75   : > { %p3657_p5 = scmp.eq.s32.totalorder (!%p3656_p13), %s3261_s21, 0 }
  0x76   : > { %395 = sbr.rel (%p3656_p13) target bundleno = 1148 (0x47c), region = 64 }
  0x7d   : > { %3133 = dma.done.wait (%p3657_p5), [#allocation3], 2048   ;;  %p3658_p0 = pmov %p3657_p5 }
  0x7f   : > { %3135 = vsyncadd (%p3658_p0), [#allocation3], 4294965248  ;;  %p3659_p6 = pmov %p3658_p0 }
  0x80   : > { %p3660_p9 = pmov %p3658_p0 }
  0x81   : > { %3137 = dma.done.wait (%p3659_p6), [#allocation6], 21248  }
  0x82   : > { %3139 = vsyncadd (%p3660_p9), [#allocation6], 4294946048  ;;  %p3661_p10 = pmov %p3658_p0 }
  0x83   : > { %p3662_p12 = pmov %p3658_p0 }
  0x84   : > { %3141 = dma.done.wait (%p3661_p10), [#allocation9], 18432  }
  0x85   : > { %3143 = vsyncadd (%p3662_p12), [#allocation9], 4294948864  ;;  %p450_p1 = scmp.lt.s32.totalorder %s3261_s21, 2  ;;  %v3174_v0 = vmov 0.0   ;;  %vm3175_vm0 = vmmov 0   ;;  %v3176_v1 = vmov 0.0|0.0  }
  0x86   : > { %2405 = vmatprep.subr.mxu0 %v3174_v0  ;;  %2407 = vmatprep.mubr.msk.f32.mxu0 %vm3175_vm0, %v3174_v0  ;;  %vm472_vm1 = vcmask 1045504   ;;  %vm468_vm2 = vcmask 48128   ;;  %v460_v2 = vld [vmem:[%s3624_s2] sm:$0x3f]  ;;  %v548_v5 = vld [vmem:[#allocation2 + $0x8] sm:$0xff]  ;;  %v549_v6 = vld [vmem:[#allocation2 + $0x10] sm:$0xff] }
  0x87   : > { %s3405_s29 = scalar_select %p450_p1, %s3261_s21, 2  ;;  %2522 = vmatprep.subr.bf16.mxu1 %v3176_v1  ;;  %2442 = vmatprep.mubr.msk.f32.mxu1 %vm3175_vm0, %v3174_v0  ;;  %v547_v4 = vld [vmem:[#allocation2] sm:$0xff]  ;;  %v550_v7 = vld [vmem:[#allocation2 + $0x18] sm:$0xff]  ;;  %v552_v11 = vld [vmem:[#allocation2 + $0x28] sm:$0xff]  ;;  %v3177_v28 = vmov 0   ;;  %vm688_vm3 = vcmask 1040384  }
  0x88   : > { %2406 = vmatpush3.msk.msra.mxu0 %vm472_vm1, %v460_v2  ;;  %v2523_v8 = vpack.c.bf16 %v548_v5, %v547_v4  ;;  %v2526_v9 = vpack.c.bf16 %v550_v7, %v549_v6  ;;  %v551_v10 = vld [vmem:[#allocation2 + $0x20] sm:$0xff]  ;;  %v553_v13 = vld [vmem:[#allocation2 + $0x30] sm:$0xff]  ;;  %v554_v14 = vld [vmem:[#allocation2 + $0x38] sm:$0xff]  ;;  %2975 = vset.pattern.permute.xlu0 %v3177_v28  ;;  %vm3178_vm4 = vmmov 1   ;;  %vm684_vm6 = vcmask 72704   ;;  %s2346_s17 = sshll.u32 %s3261_s21, 7 }
  0x89   : > { %s2320_s13 = sshll.u32 %s3405_s29, 3  ;;  %v2529_v12 = vpack.c.bf16 %v552_v11, %v551_v10  ;;  %v2532_v15 = vpack.c.bf16 %v554_v14, %v553_v13  ;;  %v555_v16 = vld [vmem:[#allocation2 + $0x40] sm:$0xff]  ;;  %v556_v17 = vld [vmem:[#allocation2 + $0x48] sm:$0xff]  ;;  %v557_v19 = vld [vmem:[#allocation2 + $0x50] sm:$0xff]  ;;  %s3580_s24 = scalar_lea.hbm %s3633_s11, %s2346_s17 }
  0x8a   : > { %s453_s20 = scalar_lea.vmem %s3622_s0, %s2320_s13  ;;  %2524 = vmatpush3.bf16.msra.mxu1 %v2523_v8  ;;  %v2535_v18 = vpack.c.bf16 %v556_v17, %v555_v16  ;;  %v558_v20 = vld [vmem:[#allocation2 + $0x58] sm:$0xff]  ;;  %v559_v22 = vld [vmem:[#allocation2 + $0x60] sm:$0xff]  ;;  %v560_v23 = vld [vmem:[#allocation2 + $0x68] sm:$0xff]  ;;  %s457_s25 = scalar_lea.vmem %s3623_s1, %s2320_s13 }
  0x8b   : > { %v458_v3 = vld [vmem:[%s453_s20] sm:$0xff]  ;;  %2525 = vmatprep.subr.bf16.mxu1 %v3176_v1  ;;  %v2538_v21 = vpack.c.bf16 %v558_v20, %v557_v19  ;;  %v2541_v24 = vpack.c.bf16 %v560_v23, %v559_v22  ;;  %v561_v25 = vld [vmem:[#allocation2 + $0x70] sm:$0xff]  ;;  %v562_v26 = vld [vmem:[#allocation2 + $0x78] sm:$0xff]  ;;  %s447_s13 = sand.u32 1, %s3154_s18   ;;  %p3665_p3 = scmp.ne.s32.totalorder %s3649_s27, 0 }
  0x8c   : > { %2408 = vmatmul.mubr.msk.f32.vlgmr.msra.gmra.mrb[0].mxu0 %vm468_vm2, %v458_v3  ;;  %v2544_v27 = vpack.c.bf16 %v562_v26, %v561_v25  ;;  %v459_v29 = vld [vmem:[%s457_s25] sm:$0xff]  ;;  %v663_v30 = vld [vmem:[#allocation5 + $0x8] sm:$0xff]  ;;  %vm3432_vm5 = vmpackc.low %vm688_vm3, %vm3178_vm4  ;;  %s2319_s30 = sshll.u32 %s447_s13, 3  ;;  %s2182_s25 = scalar_lea.sflag [#allocation4], %s447_s13 }
  0x8d   : > { %786 = vmatprep.mubr.f32.mxu0 %v3174_v0  ;;  %645 = vperm.xlu0 %2975, %v459_v29   ;;  %v674_v31 = vld [vmem:[#allocation5 + $0x60] sm:$0x1]  ;;  %v673_v35 = vld [vmem:[#allocation5 + $0x58] sm:$0x1]  ;;  %v676_v38 = vld [vmem:[#allocation5 + $0x70] sm:$0x1] }
  0x8e   : > { %2527 = vmatpush3.bf16.msra.mxu1 %v2526_v9  ;;  %v662_v32 = vld [vmem:[#allocation5] sm:$0xff]  ;;  %v2546_v33 = vpack.c.bf16 %v674_v31, %v663_v30  ;;  %v665_v37 = vld [vmem:[#allocation5 + $0x18] sm:$0xff]  ;;  %v1150_v40 = vld [vmem:[#allocation7 + $0x18] sm:$0xff]  ;;  %s449_s20 = scalar_lea.vmem [#allocation10], %s2319_s30  ;;  %s3179_s21 = smov [#allocation10]  }
  0x8f   : > { %2528 = vmatprep.subr.bf16.mxu1 %v3176_v1  ;;  %v2549_v36 = vpack.c.bf16 %v673_v35, %v662_v32  ;;  %v2552_v39 = vpack.c.bf16 %v676_v38, %v665_v37  ;;  %v1159_v41 = vld [vmem:[#allocation7 + $0x60] sm:$0xff]  ;;  %v2322_v43 = vld [vmem:[%s3625_s3] ss:$0 sm:$0xff]  ;;  %v1158_v45 = vld [vmem:[#allocation7 + $0x58] sm:$0xff]  ;;  %s2195_s28 = sshll.u32 %s449_s20, 4  ;;  %s3092_s16 = sshll.u32 %s3179_s21, 4  ;;  %s3582_s28 = int_to_ptr.vmem [resolvable:$true] %s2195_s28  ;;  %s3093_s16 = int_to_ptr.vmem [resolvable:$false] %s3092_s16 }
  0x90   : > { %2548 = vmatprep.subr.msk.bf16.mxu0 %vm3432_vm5, %v2546_v33  ;;  %v2612_v42 = vpack.c.bf16 %v1159_v41, %v1150_v40  ;;  %v1149_v44 = vld [vmem:[#allocation7 + $0x10] sm:$0xff]  ;;  %v1168_v47 = vld [vmem:[#allocation7 + $0xa8] sm:$0xff]  ;;  %v1167_v54 = vld [vmem:[#allocation7 + $0xa0] sm:$0xff]  ;;  %s3088_s14 = scalar_lea.vmem %s3582_s28, 128  ;;  %s3094_s12 = scalar_lea.vmem %s3093_s16, 256 }
  0x91   : > { %2551 = vmatpush1.bf16.msk.msra.mxu0 %vm3432_vm5, %v2549_v36  ;;  %v1177_v48 = vld [vmem:[#allocation7 + $0xf0] sm:$0xff]  ;;  %v2614_v51 = vpack.c.bf16 %v1158_v45, %v1149_v44  ;;  %v1176_v55 = vld [vmem:[#allocation7 + $0xe8] sm:$0xff]  ;;  %v1186_v57 = vld [vmem:[#allocation7 + $0x138] sm:$0xff]  ;;  %p3089_p2 = scmp.ne.s32.totalorder %s3582_s28, %s3088_s14  ;;  %p3095_p8 = scmp.lt.s32.totalorder %s3582_s28, %s3093_s16 }
  0x92   : > { %2530 = vmatpush3.bf16.msra.mxu1 %v2529_v12  ;;  %2554 = vmatprep.subr.msk.bf16.mxu0 %vm3432_vm5, %v2552_v39  ;;  %v2616_v53 = vpack.c.bf16 %v1177_v48, %v1168_v47  ;;  %v2326_v56 = vld [vmem:[%s3628_s6] ss:$0 sm:$0xff]  ;;  %v1195_v58 = vld [vmem:[#allocation7 + $0x180] sm:$0xff]  ;;  %v675_v60 = vld [vmem:[#allocation5 + $0x68] sm:$0x1]  ;;  %v2618_v3 = vpack.c.bf16 %v1176_v55, %v1167_v54  ;;  %p3096_p11 = scmp.lt.s32.totalorder %s3094_s12, %s3088_s14 }
  0x93   : > { %2531 = vmatprep.subr.bf16.mxu1 %v3176_v1  ;;  %v664_v59 = vld [vmem:[#allocation5 + $0x10] sm:$0xff]  ;;  %v2327_v61 = vld [vmem:[%s3629_s7] ss:$0 sm:$0xff]  ;;  %v667_v63 = vld [vmem:[#allocation5 + $0x28] sm:$0xff]  ;;  %v2620_v5 = vpack.c.bf16 %v1195_v58, %v1186_v57  ;;  %p3090_p4 = pnand %p3089_p2, %p3665_p3 }
  0x94   : > { %v678_v2 = vld [vmem:[#allocation5 + $0x80] sm:$0x1]  ;;  %v1194_v7 = vld [vmem:[#allocation7 + $0x178] sm:$0xff]  ;;  %v2555_v8 = vpack.c.bf16 %v675_v60, %v664_v59  ;;  %v1204_v9 = vld [vmem:[#allocation7 + $0x1c8] sm:$0xff]  ;;  %p3097_p13 = por %p3096_p11, %p3095_p8 }
  0x95   : > { %v1185_v6 = vld [vmem:[#allocation7 + $0x130] sm:$0xff]  ;;  %v2558_v12 = vpack.c.bf16 %v678_v2, %v667_v63  ;;  %v677_v14 = vld [vmem:[#allocation5 + $0x78] sm:$0x1]  ;;  %v680_v16 = vld [vmem:[#allocation5 + $0x90] sm:$0x1]  ;;  %p3091_p7 = pneg %p3090_p4 }
  0x96   : > { %2533 = vmatpush3.bf16.msra.mxu1 %v2532_v15  ;;  %v1213_v10 = vld [vmem:[#allocation7 + $0x210] sm:$0xff]  ;;  %v669_v15 = vld [vmem:[#allocation5 + $0x38] sm:$0xff]  ;;  %v2622_v17 = vpack.c.bf16 %v1194_v7, %v1185_v6  ;;  %v1203_v19 = vld [vmem:[#allocation7 + $0x1c0] sm:$0xff] }
  0x97   : > { %2534 = vmatprep.subr.bf16.mxu1 %v3176_v1  ;;  %v666_v13 = vld [vmem:[#allocation5 + $0x20] sm:$0xff]  ;;  %v1212_v20 = vld [vmem:[#allocation7 + $0x208] sm:$0xff]  ;;  %v1222_v22 = vld [vmem:[#allocation7 + $0x258] sm:$0xff]  ;;  %p3098_p5 = pnand %p3097_p13, %p3091_p7 }
  0x98   : > { %v1231_v23 = vld [vmem:[#allocation7 + $0x2a0] sm:$0xff]  ;;  %v679_v26 = vld [vmem:[#allocation5 + $0x88] sm:$0x1]  ;;  %v682_v28 = vld [vmem:[#allocation5 + $0xa0] sm:$0x1]  ;;  %v2626_v29 = vpack.c.bf16 %v1212_v20, %v1203_v19 }
  0x99   : > { %v668_v25 = vld [vmem:[#allocation5 + $0x30] sm:$0xff]  ;;  %v2628_v30 = vpack.c.bf16 %v1231_v23, %v1222_v22  ;;  %v1221_v31 = vld [vmem:[#allocation7 + $0x250] sm:$0xff]  ;;  %v1230_v32 = vld [vmem:[#allocation7 + $0x298] sm:$0xff] }
  0x9a   : > { %2536 = vmatpush3.bf16.msra.mxu1 %v2535_v18  ;;  %v2624_v18 = vpack.c.bf16 %v1213_v10, %v1204_v9  ;;  %v2567_v33 = vpack.c.bf16 %v679_v26, %v668_v25  ;;  %v1240_v35 = vld [vmem:[#allocation7 + $0x2e8] sm:$0xff]  ;;  %v1249_v36 = vld [vmem:[#allocation7 + $0x330] sm:$0xff]  ;;  %v2630_v40 = vpack.c.bf16 %v1230_v32, %v1221_v31  ;;  %v1258_v45 = vld [vmem:[#allocation7 + $0x378] sm:$0xff] }
  0x9b   : > { %2537 = vmatprep.subr.bf16.mxu1 %v3176_v1  ;;  %v670_v38 = vld [vmem:[#allocation5 + $0x40] sm:$0xff]  ;;  %v681_v39 = vld [vmem:[#allocation5 + $0x98] sm:$0x1]  ;;  %v2632_v41 = vpack.c.bf16 %v1249_v36, %v1240_v35  ;;  %v672_v47 = vld [vmem:[#allocation5 + $0x50] sm:$0xff] }
  0x9c   : > { %v2573_v44 = vpack.c.bf16 %v681_v39, %v670_v38  ;;  %v683_v48 = vld [vmem:[#allocation5 + $0xa8] sm:$0x1]  ;;  %v1147_v57 = vld [vmem:[#allocation7] sm:$0xff]  ;;  %v1156_v58 = vld [vmem:[#allocation7 + $0x48] sm:$0xff] }
  0x9d   : > { %v1266_v54 = vld [vmem:[#allocation7 + $0x3b8] sm:$0xff]  ;;  %v2577_v55 = vpack.c.bf16 %v683_v48, %v672_v47  ;;  %v1175_v60 = vld [vmem:[#allocation7 + $0xe0] sm:$0xff]  ;;  %v1165_v2 = vld [vmem:[#allocation7 + $0x90] sm:$0xff] }
  0x9e   : > { %2539 = vmatpush3.bf16.msra.mxu1 %v2538_v21  ;;  %v2561_v21 = vpack.c.bf16 %v677_v14, %v666_v13  ;;  %v1166_v59 = vld [vmem:[#allocation7 + $0x98] sm:$0xff]  ;;  %v1183_v7 = vld [vmem:[#allocation7 + $0x120] sm:$0xff]  ;;  %v1201_v14 = vld [vmem:[#allocation7 + $0x1b0] sm:$0xff] }
  0x9f   : > { %2540 = vmatprep.subr.bf16.mxu1 %v3176_v1  ;;  %v2584_v63 = vpack.c.bf16 %v1175_v60, %v1166_v59  ;;  %v1202_v9 = vld [vmem:[#allocation7 + $0x1b8] sm:$0xff]  ;;  %v1211_v10 = vld [vmem:[#allocation7 + $0x200] sm:$0xff]  ;;  %v1228_v20 = vld [vmem:[#allocation7 + $0x288] sm:$0xff] }
  0xa0   : > { %v2592_v13 = vpack.c.bf16 %v1211_v10, %v1202_v9  ;;  %v1219_v19 = vld [vmem:[#allocation7 + $0x240] sm:$0xff]  ;;  %v1237_v25 = vld [vmem:[#allocation7 + $0x2d0] sm:$0xff]  ;;  %v1246_v26 = vld [vmem:[#allocation7 + $0x318] sm:$0xff] }
  0xa1   : > { %v1247_v22 = vld [vmem:[#allocation7 + $0x320] sm:$0xff]  ;;  %v2598_v23 = vpack.c.bf16 %v1228_v20, %v1219_v19  ;;  %v1264_v32 = vld [vmem:[#allocation7 + $0x3a8] sm:$0xff]  ;;  %v1274_v35 = vld [vmem:[#allocation7 + $0x3f8] sm:$0xff] }
  0xa2   : > { %2542 = vmatpush3.bf16.msra.mxu1 %v2541_v24  ;;  %v2564_v24 = vpack.c.bf16 %v680_v16, %v669_v15  ;;  %v1210_v15 = vld [vmem:[#allocation7 + $0x1f8] sm:$0xff]  ;;  %v1220_v16 = vld [vmem:[#allocation7 + $0x248] sm:$0xff]  ;;  %v1255_v31 = vld [vmem:[#allocation7 + $0x360] sm:$0xff] }
  0xa3   : > { %2543 = vmatprep.subr.bf16.mxu1 %v3176_v1  ;;  %v1283_v36 = vld [vmem:[#allocation7 + $0x440] sm:$0xff]  ;;  %v1285_v39 = vld [vmem:[#allocation7 + $0x450] sm:$0xff]  ;;  %v1152_v47 = vld [vmem:[#allocation7 + $0x28] sm:$0xff] }
  0xa4   : > { %v2608_v38 = vpack.c.bf16 %v1283_v36, %v1274_v35  ;;  %v1161_v48 = vld [vmem:[#allocation7 + $0x70] sm:$0xff]  ;;  %v1179_v60 = vld [vmem:[#allocation7 + $0x100] sm:$0xff]  ;;  %v1180_v10 = vld [vmem:[#allocation7 + $0x108] sm:$0xff] }
  0xa5   : > { %v1171_v9 = vld [vmem:[#allocation7 + $0xc0] sm:$0xff] }
  0xa6   : > { %2545 = vmatpush3.bf16.msra.mxu1 %v2544_v27  ;;  %v671_v27 = vld [vmem:[#allocation5 + $0x48] sm:$0xff] }
  0xa7   : > { %2613 = vmatprep.subr.bf16.mxu1 %v2612_v42  ;;  %v2570_v37 = vpack.c.bf16 %v682_v28, %v671_v27  ;;  %v1239_v42 = vld [vmem:[#allocation7 + $0x2e0] sm:$0xff]  ;;  %v1256_v27 = vld [vmem:[#allocation7 + $0x368] sm:$0xff]  ;;  %v1265_v28 = vld [vmem:[#allocation7 + $0x3b0] sm:$0xff] }
 0x10c   : > { %v646_v62 = vpop.permute.xlu0 %645 }
 0x10d   : > { %v654_v4 = vmul.f32 %v2326_v56, %v646_v62  ;;  %v2582_v62 = vpack.c.bf16 %v1156_v58, %v1147_v57  ;;  %v1162_v57 = vld [vmem:[#allocation7 + $0x78] sm:$0xff] }
 0x10e   : > { %v1170_v58 = vld [vmem:[#allocation7 + $0xb8] sm:$0xff] }
 0x10f   : > { %v3452_v11 = vadd.f32 %v2327_v61, %v654_v4  ;;  %v1184_v4 = vld [vmem:[#allocation7 + $0x128] sm:$0xff] }
 0x111   : > { %2330 = vmatmul.mubr.msk.f32.vlgmr.msra.gmra.mrb[2].mxu0 %vm684_vm6, %v3452_v11 }
 0x112   : > { %2557 = vmatpush1.bf16.msk.msra.mxu0 %vm3432_vm5, %v2555_v8  ;;  %857 = vmatprep.mubr.f32.mxu0 %v3174_v0  ;;  %v1192_v8 = vld [vmem:[#allocation7 + $0x168] sm:$0xff] }
 0x113   : > { %2560 = vmatprep.subr.msk.bf16.mxu0 %vm3432_vm5, %v2558_v12  ;;  %v2590_v12 = vpack.c.bf16 %v1192_v8, %v1183_v7  ;;  %v2648_v7 = vpack.c.bf16 %v1179_v60, %v1170_v58  ;;  %v1241_v60 = vld [vmem:[#allocation7 + $0x2f0] sm:$0xff] }
 0x115   : > { %2333 = vmatmul.mubr.msk.f32.vlgmr.msra.gmra.mrb[4].mxu0 %vm684_vm6, %v3452_v11 }
 0x116   : > { %2563 = vmatpush1.bf16.msk.msra.mxu0 %vm3432_vm5, %v2561_v21  ;;  %928 = vmatprep.mubr.f32.mxu0 %v3174_v0  ;;  %v1238_v21 = vld [vmem:[#allocation7 + $0x2d8] sm:$0xff] }
 0x117   : > { %2566 = vmatprep.subr.msk.bf16.mxu0 %vm3432_vm5, %v2564_v24  ;;  %v2600_v24 = vpack.c.bf16 %v1247_v22, %v1238_v21  ;;  %v1189_v22 = vld [vmem:[#allocation7 + $0x150] sm:$0xff] }
 0x119   : > { %2336 = vmatmul.mubr.msk.f32.vlgmr.msra.gmra.mrb[6].mxu0 %vm684_vm6, %v3452_v11 }
 0x11a   : > { %2569 = vmatpush1.bf16.msk.msra.mxu0 %vm3432_vm5, %v2567_v33  ;;  %999 = vmatprep.mubr.f32.mxu0 %v3174_v0  ;;  %v2606_v33 = vpack.c.bf16 %v1264_v32, %v1255_v31  ;;  %v1205_v31 = vld [vmem:[#allocation7 + $0x1d0] sm:$0xff]  ;;  %v1214_v32 = vld [vmem:[#allocation7 + $0x218] sm:$0xff] }
 0x11b   : > { %2572 = vmatprep.subr.msk.bf16.mxu0 %vm3432_vm5, %v2570_v37  ;;  %v1276_v37 = vld [vmem:[#allocation7 + $0x408] sm:$0xff] }
 0x11d   : > { %2339 = vmatmul.mubr.msk.f32.vlgmr.msra.gmra.mrb[8].mxu0 %vm684_vm6, %v3452_v11 }
 0x11e   : > { %2575 = vmatpush1.bf16.msk.msra.mxu0 %vm3432_vm5, %v2573_v44  ;;  %1070 = vmatprep.mubr.f32.mxu0 %v3174_v0  ;;  %v1275_v44 = vld [vmem:[#allocation7 + $0x400] sm:$0xff] }
 0x11f   : > { %2576 = vmatprep.subr.bf16.mxu0 %v3176_v1 }
 0x121   : > { %2342 = vmatmul.mubr.msk.f32.vlgmr.msra.gmra.mrb[10].mxu0 %vm684_vm6, %v3452_v11 }
 0x122   : > { %2579 = vmatpush3.bf16.msk.msra.mxu0 %vm3432_vm5, %v2577_v55  ;;  %2449 = vmatprep.mubr.msk.f32.mxu0 %vm3175_vm0, %v3174_v0  ;;  %v1160_v55 = vld [vmem:[#allocation7 + $0x68] sm:$0xff] }
 0x125   : > { %2450 = vmatmul.mubr.msk.f32.vlgmr.msra.gmra.mrb[12].mxu0 %vm684_vm6, %v3452_v11  ;;  %v2594_v11 = vpack.c.bf16 %v1210_v15, %v1201_v14  ;;  %v1190_v14 = vld [vmem:[#allocation7 + $0x158] sm:$0xff]  ;;  %v1199_v15 = vld [vmem:[#allocation7 + $0x1a0] sm:$0xff] }
 0x126   : > { %1355 = vmatprep.mubr.f32.mxu0 %v3174_v0  ;;  %v2684_v21 = vpack.c.bf16 %v1199_v15, %v1190_v14  ;;  %v1268_v14 = vld [vmem:[#allocation7 + $0x3c8] sm:$0xff] }
 0x15f   : > { %v542_v46 = vpop.f32.mrb[0].mxu0 }
 0x160   : > { %v543_v49 = vadd.f32 %v2322_v43, %v542_v46  ;;  %v2409_v50 = vpop.f32.mrb[1].mxu0  ;;  %v1248_v43 = vld [vmem:[#allocation7 + $0x328] sm:$0xff]  ;;  %v1267_v46 = vld [vmem:[#allocation7 + $0x3c0] sm:$0xff] }
 0x161   : > { %v1157_v50 = vld [vmem:[#allocation7 + $0x50] sm:$0xff] }
 0x162   : > { %v546_v52 = vmax.f32 %v543_v49, 0.0  ;;  %v1148_v49 = vld [vmem:[#allocation7 + $0x8] sm:$0xff] }
 0x163   : > { %v2580_v56 = vpack.c.bf16 %v1157_v50, %v1148_v49  ;;  %v1154_v49 = vld [vmem:[#allocation7 + $0x38] sm:$0xff]  ;;  %v2644_v50 = vpack.c.bf16 %v1161_v48, %v1152_v47  ;;  %v1232_v47 = vld [vmem:[#allocation7 + $0x2a8] sm:$0xff] }
 0x164   : > { %2443 = vmatmul.mubr.f32.vlgmr.msra.gmra.mrb[0].mxu1 %v546_v52  ;;  %v2636_v52 = vpack.c.bf16 %v1267_v46, %v1258_v45  ;;  %v1284_v45 = vld [vmem:[#allocation7 + $0x448] sm:$0xff] }
 0x165   : > { %2615 = vmatpush1.bf16.msra.mxu1 %v2614_v51  ;;  %1426 = vmatprep.mubr.f32.mxu1 %v3174_v0  ;;  %v2634_v51 = vpack.c.bf16 %v1248_v43, %v1239_v42  ;;  %v2640_v42 = vpack.c.bf16 %v1285_v39, %v1276_v37  ;;  %v2642_v46 = vpack.c.bf16 %v1284_v45, %v1275_v44  ;;  %v1207_v37 = vld [vmem:[#allocation7 + $0x1e0] sm:$0xff]  ;;  %v1224_v39 = vld [vmem:[#allocation7 + $0x268] sm:$0xff] }
 0x166   : > { %2617 = vmatprep.subr.bf16.mxu1 %v2616_v53  ;;  %v1257_v53 = vld [vmem:[#allocation7 + $0x370] sm:$0xff]  ;;  %2581 = vmatprep.subr.bf16.mxu0 %v2580_v56  ;;  %v2658_v44 = vpack.c.bf16 %v1214_v32, %v1205_v31  ;;  %v1286_v32 = vld [vmem:[#allocation7 + $0x458] sm:$0xff] }
 0x167   : > { %v2638_v61 = vpack.c.bf16 %v1266_v54, %v1257_v53  ;;  %2583 = vmatpush1.bf16.msra.mxu0 %v2582_v62  ;;  %v2325_v53 = vld [vmem:[%s3627_s5] ss:$0 sm:$0xff]  ;;  %v1151_v54 = vld [vmem:[#allocation7 + $0x20] sm:$0xff] }
 0x168   : > { %2585 = vmatprep.subr.bf16.mxu0 %v2584_v63  ;;  %v1153_v56 = vld [vmem:[#allocation7 + $0x30] sm:$0xff] }
 0x169   : > { %2619 = vmatpush1.bf16.msra.mxu1 %v2618_v3  ;;  %v1174_v3 = vld [vmem:[#allocation7 + $0xd8] sm:$0xff]  ;;  %v1181_v62 = vld [vmem:[#allocation7 + $0x110] sm:$0xff] }
 0x16a   : > { %2621 = vmatprep.subr.bf16.mxu1 %v2620_v5  ;;  %v1193_v5 = vld [vmem:[#allocation7 + $0x170] sm:$0xff]  ;;  %v2586_v6 = vpack.c.bf16 %v1174_v3, %v1165_v2  ;;  %v2646_v3 = vpack.c.bf16 %v1160_v55, %v1151_v54  ;;  %v1251_v55 = vld [vmem:[#allocation7 + $0x340] sm:$0xff] }
 0x16b   : > { %v2588_v34 = vpack.c.bf16 %v1193_v5, %v1184_v4  ;;  %v2678_v4 = vpack.c.bf16 %v1162_v57, %v1153_v56  ;;  %v1169_v5 = vld [vmem:[#allocation7 + $0xb0] sm:$0xff]  ;;  %v1244_v56 = vld [vmem:[#allocation7 + $0x308] sm:$0xff] }
 0x16c   : > { %2587 = vmatpush1.bf16.msra.mxu0 %v2586_v6  ;;  %v1178_v6 = vld [vmem:[#allocation7 + $0xf8] sm:$0xff]  ;;  %v1253_v57 = vld [vmem:[#allocation7 + $0x350] sm:$0xff] }
 0x16d   : > { %2623 = vmatpush1.bf16.msra.mxu1 %v2622_v17  ;;  %2589 = vmatprep.subr.bf16.mxu0 %v2588_v34  ;;  %v1229_v17 = vld [vmem:[#allocation7 + $0x290] sm:$0xff] }
 0x16e   : > { %2625 = vmatprep.subr.bf16.mxu1 %v2624_v18  ;;  %v2596_v18 = vpack.c.bf16 %v1229_v17, %v1220_v16  ;;  %v2650_v16 = vpack.c.bf16 %v1178_v6, %v1169_v5  ;;  %v2682_v17 = vpack.c.bf16 %v1180_v10, %v1171_v9  ;;  %v1260_v5 = vld [vmem:[#allocation7 + $0x388] sm:$0xff]  ;;  %v1271_v9 = vld [vmem:[#allocation7 + $0x3e0] sm:$0xff] }
 0x170   : > { %2591 = vmatpush1.bf16.msra.mxu0 %v2590_v12  ;;  %v1188_v12 = vld [vmem:[#allocation7 + $0x148] sm:$0xff] }
 0x171   : > { %2627 = vmatpush1.bf16.msra.mxu1 %v2626_v29  ;;  %2593 = vmatprep.subr.bf16.mxu0 %v2592_v13  ;;  %v2602_v29 = vpack.c.bf16 %v1246_v26, %v1237_v25  ;;  %v1197_v13 = vld [vmem:[#allocation7 + $0x190] sm:$0xff]  ;;  %v1215_v26 = vld [vmem:[#allocation7 + $0x220] sm:$0xff] }
 0x172   : > { %2629 = vmatprep.subr.bf16.mxu1 %v2628_v30  ;;  %v2604_v30 = vpack.c.bf16 %v1265_v28, %v1256_v27  ;;  %v2652_v20 = vpack.c.bf16 %v1197_v13, %v1188_v12  ;;  %v1208_v27 = vld [vmem:[#allocation7 + $0x1e8] sm:$0xff]  ;;  %v1217_v28 = vld [vmem:[#allocation7 + $0x230] sm:$0xff]  ;;  %v1259_v13 = vld [vmem:[#allocation7 + $0x380] sm:$0xff] }
 0x173   : > { %v2688_v36 = vpack.c.bf16 %v1217_v28, %v1208_v27  ;;  %v1277_v28 = vld [vmem:[#allocation7 + $0x410] sm:$0xff] }
 0x174   : > { %2595 = vmatpush1.bf16.msra.mxu0 %v2594_v11  ;;  %v1187_v11 = vld [vmem:[#allocation7 + $0x140] sm:$0xff] }
 0x175   : > { %2631 = vmatpush1.bf16.msra.mxu1 %v2630_v40  ;;  %2597 = vmatprep.subr.bf16.mxu0 %v2596_v18  ;;  %v1273_v40 = vld [vmem:[#allocation7 + $0x3f0] sm:$0xff]  ;;  %v1196_v18 = vld [vmem:[#allocation7 + $0x188] sm:$0xff] }
 0x176   : > { %2633 = vmatprep.subr.bf16.mxu1 %v2632_v41  ;;  %v1282_v41 = vld [vmem:[#allocation7 + $0x438] sm:$0xff] }
 0x177   : > { %v2610_v43 = vpack.c.bf16 %v1282_v41, %v1273_v40  ;;  %v1233_v41 = vld [vmem:[#allocation7 + $0x2b0] sm:$0xff] }
 0x178   : > { %2599 = vmatpush1.bf16.msra.mxu0 %v2598_v23  ;;  %v1198_v23 = vld [vmem:[#allocation7 + $0x198] sm:$0xff] }
 0x179   : > { %2635 = vmatpush1.bf16.msra.mxu1 %v2634_v51  ;;  %2601 = vmatprep.subr.bf16.mxu0 %v2600_v24  ;;  %v1163_v51 = vld [vmem:[#allocation7 + $0x80] sm:$0xff]  ;;  %v1206_v24 = vld [vmem:[#allocation7 + $0x1d8] sm:$0xff] }
 0x17a   : > { %2637 = vmatprep.subr.bf16.mxu1 %v2636_v52  ;;  %v2676_v52 = vpack.c.bf16 %v1163_v51, %v1154_v49  ;;  %v2656_v35 = vpack.c.bf16 %v1215_v26, %v1206_v24  ;;  %v2660_v49 = vpack.c.bf16 %v1233_v41, %v1224_v39  ;;  %v1225_v51 = vld [vmem:[#allocation7 + $0x270] sm:$0xff]  ;;  %v2670_v26 = vpack.c.bf16 %v1268_v14, %v1259_v13  ;;  %v1155_v41 = vld [vmem:[#allocation7 + $0x40] sm:$0xff]  ;;  %v1673_v14 = vld [vmem:[#allocation8 + $0x48] sm:$0xff] }
 0x17b   : > { %v1289_v24 = vld [vmem:[#allocation7 + $0x470] sm:$0xff]  ;;  %v1664_v13 = vld [vmem:[#allocation8] sm:$0xff] }
 0x17c   : > { %2603 = vmatpush1.bf16.msra.mxu0 %v2602_v29  ;;  %v2654_v29 = vpack.c.bf16 %v1196_v18, %v1187_v11  ;;  %v1261_v11 = vld [vmem:[#allocation7 + $0x390] sm:$0xff]  ;;  %v1270_v18 = vld [vmem:[#allocation7 + $0x3d8] sm:$0xff] }
 0x17d   : > { %2639 = vmatpush1.bf16.msra.mxu1 %v2638_v61  ;;  %2605 = vmatprep.subr.bf16.mxu0 %v2604_v30  ;;  %v1172_v61 = vld [vmem:[#allocation7 + $0xc8] sm:$0xff]  ;;  %v2686_v30 = vpack.c.bf16 %v1198_v23, %v1189_v22  ;;  %v1287_v22 = vld [vmem:[#allocation7 + $0x460] sm:$0xff]  ;;  %v2702_v27 = vpack.c.bf16 %v1270_v18, %v1261_v11  ;;  %v1666_v11 = vld [vmem:[#allocation8 + $0x10] sm:$0xff] }
 0x17e   : > { %2641 = vmatprep.subr.bf16.mxu1 %v2640_v42  ;;  %v2680_v8 = vpack.c.bf16 %v1181_v62, %v1172_v61  ;;  %v1226_v42 = vld [vmem:[#allocation7 + $0x278] sm:$0xff]  ;;  %v1280_v23 = vld [vmem:[#allocation7 + $0x428] sm:$0xff] }
 0x17f   : > { %v1250_v61 = vld [vmem:[#allocation7 + $0x338] sm:$0xff]  ;;  %v2704_v31 = vpack.c.bf16 %v1289_v24, %v1280_v23  ;;  %v1692_v23 = vld [vmem:[#allocation8 + $0xe0] sm:$0xff] }
 0x180   : > { %2607 = vmatpush1.bf16.msra.mxu0 %v2606_v33  ;;  %v2666_v10 = vpack.c.bf16 %v1250_v61, %v1241_v60  ;;  %v1263_v61 = vld [vmem:[#allocation7 + $0x3a0] sm:$0xff]  ;;  %v1675_v18 = vld [vmem:[#allocation8 + $0x58] sm:$0xff] }
 0x181   : > { %2609 = vmatprep.subr.bf16.mxu0 %v2608_v38  ;;  %2643 = vmatpush1.bf16.msra.mxu1 %v2642_v46  ;;  %v1216_v38 = vld [vmem:[#allocation7 + $0x228] sm:$0xff]  ;;  %v1223_v46 = vld [vmem:[#allocation7 + $0x260] sm:$0xff] }
 0x182   : > { %2677 = vmatprep.subr.bf16.mxu1 %v2676_v52  ;;  %v2690_v45 = vpack.c.bf16 %v1216_v38, %v1207_v37  ;;  %v1234_v52 = vld [vmem:[#allocation7 + $0x2b8] sm:$0xff]  ;;  %v2662_v58 = vpack.c.bf16 %v1232_v47, %v1223_v46  ;;  %v2674_v38 = vpack.c.bf16 %v1286_v32, %v1277_v28  ;;  %v1191_v47 = vld [vmem:[#allocation7 + $0x160] sm:$0xff] }
 0x183   : > { %v1691_v28 = vld [vmem:[#allocation8 + $0xd8] sm:$0xff]  ;;  %v1684_v32 = vld [vmem:[#allocation8 + $0xa0] sm:$0xff] }
 0x184   : > { %2611 = vmatpush1.bf16.msra.mxu0 %v2610_v43  ;;  %v1235_v43 = vld [vmem:[#allocation7 + $0x2c0] sm:$0xff] }
 0x185   : > { %2645 = vmatprep.subr.bf16.mxu0 %v2644_v50  ;;  %v2692_v50 = vpack.c.bf16 %v1235_v43, %v1226_v42  ;;  %v1164_v42 = vld [vmem:[#allocation7 + $0x88] sm:$0xff] }
 0x186   : > { %v2709_v43 = vpack.c.bf16 %v1164_v42, %v1155_v41  ;;  %v1712_v41 = vld [vmem:[#allocation8 + $0x180] sm:$0xff] }
 0x1e4   : > { %v3497_v19 = vpop.f32.mrb[2].mxu0 }
 0x1e5   : > { %v3499_v25 = vpop.f32.mrb[3].mxu0 }
 0x1e8   : > { %v3503_v33 = vpop.f32.mrb[4].mxu0 }
 0x1e9   : > { %v3505_v40 = vpop.f32.mrb[5].mxu0 }
 0x1ec   : > { %v3507_v48 = vpop.f32.mrb[6].mxu0 }
 0x1ed   : > { %v3509_v54 = vpop.f32.mrb[7].mxu0 }
 0x1f0   : > { %v3511_v62 = vpop.f32.mrb[8].mxu0 }
 0x1f1   : > { %v3513_v6 = vpop.f32.mrb[9].mxu0 }
 0x1f4   : > { %v3515_v15 = vpop.f32.mrb[10].mxu0 }
 0x237   : > { %v636_v59 = vpop.f32.mrb[0].mxu1 }
 0x238   : > { %v637_v63 = vadd.f32 %v2325_v53, %v636_v59  ;;  %v2444_v2 = vpop.f32.mrb[1].mxu1  ;;  %v1242_v53 = vld [vmem:[#allocation7 + $0x2f8] sm:$0xff]  ;;  %v2694_v59 = vpack.c.bf16 %v1234_v52, %v1225_v51  ;;  %v1209_v51 = vld [vmem:[#allocation7 + $0x1f0] sm:$0xff] }
 0x239   : > { %v2696_v2 = vpack.c.bf16 %v1253_v57, %v1244_v56  ;;  %v1218_v52 = vld [vmem:[#allocation7 + $0x238] sm:$0xff]  ;;  %v1236_v56 = vld [vmem:[#allocation7 + $0x2c8] sm:$0xff] }
 0x23a   : > { %v3493_v34 = vmax.f32 %v637_v63, 0.0  ;;  %v2664_v63 = vpack.c.bf16 %v1251_v55, %v1242_v53  ;;  %v2718_v53 = vpack.c.bf16 %v1218_v52, %v1209_v51  ;;  %v1227_v55 = vld [vmem:[#allocation7 + $0x280] sm:$0xff] }
 0x23b   : > { %v2721_v57 = vpack.c.bf16 %v1236_v56, %v1227_v55  ;;  %v1728_v51 = vld [vmem:[#allocation8 + $0x200] sm:$0xff]  ;;  %v1721_v55 = vld [vmem:[#allocation8 + $0x1c8] sm:$0xff]  ;;  %v1730_v56 = vld [vmem:[#allocation8 + $0x210] sm:$0xff] }
 0x23c   : > { %1356 = vmatmul.mubr.f32.vlgmr.msra.gmra.mrb[14].mxu0 %v3493_v34  ;;  %1427 = vmatmul.mubr.f32.vlgmr.msra.gmra.mrb[2].mxu1 %v3493_v34 }
 0x23d   : > { %2647 = vmatpush1.bf16.msra.mxu0 %v2646_v3  ;;  %2679 = vmatpush1.bf16.msra.mxu1 %v2678_v4  ;;  %v1243_v3 = vld [vmem:[#allocation7 + $0x300] sm:$0xff]  ;;  %v1252_v4 = vld [vmem:[#allocation7 + $0x348] sm:$0xff] }
 0x23e   : > { %2649 = vmatprep.subr.bf16.mxu0 %v2648_v7  ;;  %2681 = vmatprep.subr.bf16.mxu1 %v2680_v8  ;;  %v1269_v7 = vld [vmem:[#allocation7 + $0x3d0] sm:$0xff]  ;;  %v1262_v8 = vld [vmem:[#allocation7 + $0x398] sm:$0xff]  ;;  %v2698_v12 = vpack.c.bf16 %v1252_v4, %v1243_v3 }
 0x23f   : > { %1497 = vmatprep.mubr.f32.mxu0 %v3174_v0  ;;  %1568 = vmatprep.mubr.f32.mxu1 %v3174_v0  ;;  %v1281_v3 = vld [vmem:[#allocation7 + $0x430] sm:$0xff]  ;;  %v1290_v4 = vld [vmem:[#allocation7 + $0x478] sm:$0xff] }
 0x241   : > { %2651 = vmatpush1.bf16.msra.mxu0 %v2650_v16  ;;  %2683 = vmatpush1.bf16.msra.mxu1 %v2682_v17  ;;  %v2668_v16 = vpack.c.bf16 %v1269_v7, %v1260_v5  ;;  %v2700_v17 = vpack.c.bf16 %v1271_v9, %v1262_v8  ;;  %v2730_v5 = vpack.c.bf16 %v1290_v4, %v1281_v3  ;;  %v1665_v7 = vld [vmem:[#allocation8 + $0x8] sm:$0xff]  ;;  %v1674_v8 = vld [vmem:[#allocation8 + $0x50] sm:$0xff]  ;;  %v1667_v9 = vld [vmem:[#allocation8 + $0x18] sm:$0xff] }
 0x242   : > { %2653 = vmatprep.subr.bf16.mxu0 %v2652_v20  ;;  %2685 = vmatprep.subr.bf16.mxu1 %v2684_v21  ;;  %v1278_v20 = vld [vmem:[#allocation7 + $0x418] sm:$0xff]  ;;  %v3517_v21 = vpop.f32.mrb[11].mxu0  ;;  %v1746_v3 = vld [vmem:[#allocation8 + $0x290] sm:$0xff] }
 0x243   : > { %v1739_v4 = vld [vmem:[#allocation8 + $0x258] sm:$0xff] }
 0x245   : > { %2655 = vmatpush1.bf16.msra.mxu0 %v2654_v29  ;;  %2687 = vmatpush1.bf16.msra.mxu1 %v2686_v30  ;;  %v3519_v29 = vpop.f32.mrb[12].mxu0  ;;  %v2672_v30 = vpack.c.bf16 %v1287_v22, %v1278_v20  ;;  %v2766_v20 = vpack.c.bf16 %v1675_v18, %v1666_v11  ;;  %v1683_v22 = vld [vmem:[#allocation8 + $0x98] sm:$0xff]  ;;  %v1757_v11 = vld [vmem:[#allocation8 + $0x2e8] sm:$0xff]  ;;  %v1766_v18 = vld [vmem:[#allocation8 + $0x330] sm:$0xff] }
 0x246   : > { %2657 = vmatprep.subr.bf16.mxu0 %v2656_v35  ;;  %2689 = vmatprep.subr.bf16.mxu1 %v2688_v36  ;;  %v1279_v35 = vld [vmem:[#allocation7 + $0x420] sm:$0xff]  ;;  %v1288_v36 = vld [vmem:[#allocation7 + $0x468] sm:$0xff]  ;;  %v2451_v37 = vpop.f32.mrb[13].mxu0  ;;  %v2736_v24 = vpack.c.bf16 %v1692_v23, %v1683_v22 }
 0x247   : > { %v2706_v39 = vpack.c.bf16 %v1288_v36, %v1279_v35  ;;  %v1693_v35 = vld [vmem:[#allocation8 + $0xe8] sm:$0xff] }
 0x248   : > { %v1701_v36 = vld [vmem:[#allocation8 + $0x128] sm:$0xff]  ;;  %v2770_v37 = vpack.c.bf16 %v1693_v35, %v1684_v32  ;;  %v1775_v32 = vld [vmem:[#allocation8 + $0x378] sm:$0xff]  ;;  %v1784_v35 = vld [vmem:[#allocation8 + $0x3c0] sm:$0xff] }
 0x249   : > { %2659 = vmatpush1.bf16.msra.mxu0 %v2658_v44  ;;  %2691 = vmatpush1.bf16.msra.mxu1 %v2690_v45  ;;  %v1173_v44 = vld [vmem:[#allocation7 + $0xd0] sm:$0xff]  ;;  %v1182_v45 = vld [vmem:[#allocation7 + $0x118] sm:$0xff] }
 0x24a   : > { %2661 = vmatprep.subr.bf16.mxu0 %v2660_v49  ;;  %2693 = vmatprep.subr.bf16.mxu1 %v2692_v50  ;;  %v2712_v46 = vpack.c.bf16 %v1182_v45, %v1173_v44  ;;  %v1200_v49 = vld [vmem:[#allocation7 + $0x1a8] sm:$0xff]  ;;  %v1700_v44 = vld [vmem:[#allocation8 + $0x120] sm:$0xff] }
 0x24b   : > { %v2715_v50 = vpack.c.bf16 %v1200_v49, %v1191_v47  ;;  %v1709_v45 = vld [vmem:[#allocation8 + $0x168] sm:$0xff]  ;;  %v1711_v49 = vld [vmem:[#allocation8 + $0x178] sm:$0xff] }
 0x24c   : > { %v2742_v47 = vpack.c.bf16 %v1709_v45, %v1700_v44  ;;  %v1783_v44 = vld [vmem:[#allocation8 + $0x3b8] sm:$0xff] }
 0x24d   : > { %2663 = vmatpush1.bf16.msra.mxu0 %v2662_v58  ;;  %2695 = vmatpush1.bf16.msra.mxu1 %v2694_v59  ;;  %v1245_v58 = vld [vmem:[#allocation7 + $0x310] sm:$0xff]  ;;  %v1254_v59 = vld [vmem:[#allocation7 + $0x358] sm:$0xff] }
 0x24e   : > { %2665 = vmatprep.subr.bf16.mxu0 %v2664_v63  ;;  %2697 = vmatprep.subr.bf16.mxu1 %v2696_v2  ;;  %v2724_v60 = vpack.c.bf16 %v1254_v59, %v1245_v58  ;;  %v1272_v63 = vld [vmem:[#allocation7 + $0x3e8] sm:$0xff]  ;;  %v2776_v58 = vpack.c.bf16 %v1730_v56, %v1721_v55  ;;  %v1727_v59 = vld [vmem:[#allocation8 + $0x1f8] sm:$0xff] }
 0x24f   : > { %v2727_v2 = vpack.c.bf16 %v1272_v63, %v1263_v61  ;;  %v1729_v61 = vld [vmem:[#allocation8 + $0x208] sm:$0xff]  ;;  %v1799_v55 = vld [vmem:[#allocation8 + $0x438] sm:$0xff] }
 0x251   : > { %2667 = vmatpush1.bf16.msra.mxu0 %v2666_v10  ;;  %2699 = vmatpush1.bf16.msra.mxu1 %v2698_v12  ;;  %v2732_v10 = vpack.c.bf16 %v1674_v8, %v1665_v7  ;;  %v1676_v12 = vld [vmem:[#allocation8 + $0x60] sm:$0xff] }
 0x252   : > { %2669 = vmatprep.subr.bf16.mxu0 %v2668_v16  ;;  %2701 = vmatprep.subr.bf16.mxu1 %v2700_v17  ;;  %v2764_v16 = vpack.c.bf16 %v1676_v12, %v1667_v9  ;;  %v2734_v17 = vpack.c.bf16 %v1673_v14, %v1664_v13  ;;  %v1748_v8 = vld [vmem:[#allocation8 + $0x2a0] sm:$0xff]  ;;  %v1738_v13 = vld [vmem:[#allocation8 + $0x250] sm:$0xff]  ;;  %v1747_v14 = vld [vmem:[#allocation8 + $0x298] sm:$0xff] }
 0x253   : > { %v1736_v9 = vld [vmem:[#allocation8 + $0x240] sm:$0xff]  ;;  %v2780_v12 = vpack.c.bf16 %v1748_v8, %v1739_v4  ;;  %v2782_v22 = vpack.c.bf16 %v1747_v14, %v1738_v13 }
 0x254   : > { %v1680_v4 = vld [vmem:[#allocation8 + $0x80] sm:$0xff] }
 0x255   : > { %2671 = vmatpush1.bf16.msra.mxu0 %v2670_v26  ;;  %2703 = vmatpush1.bf16.msra.mxu1 %v2702_v27  ;;  %v1694_v26 = vld [vmem:[#allocation8 + $0xf0] sm:$0xff] }
 0x256   : > { %2673 = vmatprep.subr.bf16.mxu0 %v2672_v30  ;;  %2705 = vmatprep.subr.bf16.mxu1 %v2704_v31  ;;  %v1682_v27 = vld [vmem:[#allocation8 + $0x90] sm:$0xff] }
 0x257   : > { %v2738_v31 = vpack.c.bf16 %v1691_v28, %v1682_v27  ;;  %v2784_v27 = vpack.c.bf16 %v1766_v18, %v1757_v11  ;;  %v1765_v28 = vld [vmem:[#allocation8 + $0x328] sm:$0xff] }
 0x259   : > { %2675 = vmatpush1.bf16.msra.mxu0 %v2674_v38  ;;  %2707 = vmatpush1.bf16.msra.mxu1 %v2706_v39  ;;  %v1710_v38 = vld [vmem:[#allocation8 + $0x170] sm:$0xff]  ;;  %v1703_v39 = vld [vmem:[#allocation8 + $0x138] sm:$0xff] }
 0x25a   : > { %2708 = vmatprep.subr.bf16.mxu0 %v3176_v1  ;;  %2733 = vmatprep.subr.bf16.mxu1 %v2732_v10  ;;  %v2740_v42 = vpack.c.bf16 %v1710_v38, %v1701_v36  ;;  %v1745_v10 = vld [vmem:[#allocation8 + $0x288] sm:$0xff] }
 0x25c   : > { %1498 = vmatmul.mubr.f32.vlgmr.msra.gmra.mrb[16].mxu0 %v3493_v34  ;;  %1569 = vmatmul.mubr.f32.vlgmr.msra.gmra.mrb[4].mxu1 %v3493_v34 }
 0x25d   : > { %2710 = vmatpush3.bf16.msra.mxu0 %v2709_v43  ;;  %2484 = vmatprep.mubr.msk.f32.mxu0 %vm3175_vm0, %v3174_v0  ;;  %v2772_v43 = vpack.c.bf16 %v1712_v41, %v1703_v39  ;;  %v1772_v39 = vld [vmem:[#allocation8 + $0x360] sm:$0xff]  ;;  %v1781_v41 = vld [vmem:[#allocation8 + $0x3a8] sm:$0xff] }
 0x25e   : > { %2711 = vmatprep.subr.bf16.mxu0 %v3176_v1  ;;  %1872 = vmatprep.mubr.f32.mxu1 %v3174_v0  ;;  %v2758_v45 = vpack.c.bf16 %v1781_v41, %v1772_v39 }
 0x25f   : > { %2735 = vmatpush1.bf16.msra.mxu1 %v2734_v17  ;;  %v1764_v17 = vld [vmem:[#allocation8 + $0x320] sm:$0xff] }
 0x260   : > { %2737 = vmatprep.subr.bf16.mxu1 %v2736_v24  ;;  %v1763_v24 = vld [vmem:[#allocation8 + $0x318] sm:$0xff] }
 0x261   : > { %2713 = vmatpush3.bf16.msra.mxu0 %v2712_v46  ;;  %v1702_v46 = vld [vmem:[#allocation8 + $0x130] sm:$0xff] }
 0x262   : > { %2714 = vmatprep.subr.bf16.mxu0 %v3176_v1  ;;  %v2774_v52 = vpack.c.bf16 %v1711_v49, %v1702_v46  ;;  %v1800_v49 = vld [vmem:[#allocation8 + $0x440] sm:$0xff] }
 0x263   : > { %2739 = vmatpush1.bf16.msra.mxu1 %v2738_v31  ;;  %v1782_v31 = vld [vmem:[#allocation8 + $0x3b0] sm:$0xff] }
 0x264   : > { %2741 = vmatprep.subr.bf16.mxu1 %v2740_v42  ;;  %v2788_v42 = vpack.c.bf16 %v1784_v35, %v1775_v32 }
 0x265   : > { %2716 = vmatpush3.bf16.msra.mxu0 %v2715_v50  ;;  %v1719_v50 = vld [vmem:[#allocation8 + $0x1b8] sm:$0xff] }
 0x266   : > { %2717 = vmatprep.subr.bf16.mxu0 %v3176_v1 }
 0x267   : > { %2743 = vmatpush1.bf16.msra.mxu1 %v2742_v47  ;;  %v1791_v47 = vld [vmem:[#allocation8 + $0x3f8] sm:$0xff] }
 0x269   : > { %2719 = vmatpush3.bf16.msra.mxu0 %v2718_v53  ;;  %v2744_v53 = vpack.c.bf16 %v1728_v51, %v1719_v50  ;;  %v1793_v50 = vld [vmem:[#allocation8 + $0x408] sm:$0xff]  ;;  %v2760_v51 = vpack.c.bf16 %v1800_v49, %v1791_v47  ;;  %v1698_v47 = vld [vmem:[#allocation8 + $0x110] sm:$0xff] }
 0x26a   : > { %2720 = vmatprep.subr.bf16.mxu0 %v3176_v1 }
 0x26b   : > { %2745 = vmatprep.subr.bf16.mxu1 %v2744_v53  ;;  %v1790_v53 = vld [vmem:[#allocation8 + $0x3f0] sm:$0xff] }
 0x26d   : > { %2722 = vmatpush3.bf16.msra.mxu0 %v2721_v57  ;;  %v1718_v57 = vld [vmem:[#allocation8 + $0x1b0] sm:$0xff] }
 0x26e   : > { %2723 = vmatprep.subr.bf16.mxu0 %v3176_v1  ;;  %v2746_v63 = vpack.c.bf16 %v1727_v59, %v1718_v57  ;;  %v2762_v57 = vpack.c.bf16 %v1799_v55, %v1790_v53  ;;  %v1801_v59 = vld [vmem:[#allocation8 + $0x448] sm:$0xff]  ;;  %v1695_v53 = vld [vmem:[#allocation8 + $0xf8] sm:$0xff] }
 0x270   : > { %2747 = vmatpush1.bf16.msra.mxu1 %v2746_v63  ;;  %v1678_v63 = vld [vmem:[#allocation8 + $0x70] sm:$0xff] }
 0x271   : > { %2725 = vmatpush3.bf16.msra.mxu0 %v2724_v60  ;;  %v1720_v60 = vld [vmem:[#allocation8 + $0x1c0] sm:$0xff] }
 0x272   : > { %2726 = vmatprep.subr.bf16.mxu0 %v3176_v1 }
 0x275   : > { %2728 = vmatpush3.bf16.msra.mxu0 %v2727_v2  ;;  %v1737_v2 = vld [vmem:[#allocation8 + $0x248] sm:$0xff] }
 0x276   : > { %2729 = vmatprep.subr.bf16.mxu0 %v3176_v1  ;;  %v2748_v7 = vpack.c.bf16 %v1746_v3, %v1737_v2  ;;  %v1671_v2 = vld [vmem:[#allocation8 + $0x38] sm:$0xff] }
 0x278   : > { %2749 = vmatprep.subr.bf16.mxu1 %v2748_v7 }
 0x279   : > { %2731 = vmatpush3.bf16.msra.mxu0 %v2730_v5  ;;  %v2778_v5 = vpack.c.bf16 %v1729_v61, %v1720_v60  ;;  %v1669_v61 = vld [vmem:[#allocation8 + $0x28] sm:$0xff] }
 0x27a   : > { %2765 = vmatprep.subr.bf16.mxu0 %v2764_v16  ;;  %v1755_v16 = vld [vmem:[#allocation8 + $0x2d8] sm:$0xff]  ;;  %v2796_v3 = vpack.c.bf16 %v1678_v63, %v1669_v61  ;;  %v1714_v61 = vld [vmem:[#allocation8 + $0x190] sm:$0xff] }
 0x27b   : > { %v2752_v23 = vpack.c.bf16 %v1764_v17, %v1755_v16  ;;  %v1707_v63 = vld [vmem:[#allocation8 + $0x158] sm:$0xff] }
 0x27c   : > { %2485 = vmatmul.mubr.f32.vlgmr.msra.gmra.mrb[18].mxu0 %v3493_v34  ;;  %v1685_v34 = vld [vmem:[#allocation8 + $0xa8] sm:$0xff] }
 0x27d   : > { %1943 = vmatprep.mubr.f32.mxu0 %v3174_v0  ;;  %2767 = vmatpush1.bf16.msra.mxu0 %v2766_v20  ;;  %v2768_v30 = vpack.c.bf16 %v1694_v26, %v1685_v34  ;;  %v2750_v20 = vpack.c.bf16 %v1745_v10, %v1736_v9  ;;  %v1754_v34 = vld [vmem:[#allocation8 + $0x2d0] sm:$0xff]  ;;  %v1756_v26 = vld [vmem:[#allocation8 + $0x2e0] sm:$0xff] }
 0x27e   : > { %v2754_v36 = vpack.c.bf16 %v1763_v24, %v1754_v34 }
 0x27f   : > { %2769 = vmatprep.subr.bf16.mxu0 %v2768_v30  ;;  %v1773_v30 = vld [vmem:[#allocation8 + $0x368] sm:$0xff]  ;;  %2751 = vmatpush1.bf16.msra.mxu1 %v2750_v20 }
 0x280   : > { %2753 = vmatprep.subr.bf16.mxu1 %v2752_v23  ;;  %v2756_v38 = vpack.c.bf16 %v1782_v31, %v1773_v30 }
 0x281   : > { %2771 = vmatpush1.bf16.msra.mxu0 %v2770_v37  ;;  %v2786_v37 = vpack.c.bf16 %v1765_v28, %v1756_v26 }
 0x282   : > { %2773 = vmatprep.subr.bf16.mxu0 %v2772_v43  ;;  %v1774_v43 = vld [vmem:[#allocation8 + $0x370] sm:$0xff] }
 0x283   : > { %2755 = vmatpush1.bf16.msra.mxu1 %v2754_v36  ;;  %v2790_v46 = vpack.c.bf16 %v1783_v44, %v1774_v43  ;;  %v1679_v43 = vld [vmem:[#allocation8 + $0x78] sm:$0xff] }
 0x284   : > { %2757 = vmatprep.subr.bf16.mxu1 %v2756_v38  ;;  %v1677_v38 = vld [vmem:[#allocation8 + $0x68] sm:$0xff]  ;;  %v1687_v44 = vld [vmem:[#allocation8 + $0xb8] sm:$0xff] }
 0x285   : > { %2775 = vmatpush1.bf16.msra.mxu0 %v2774_v52  ;;  %v1802_v52 = vld [vmem:[#allocation8 + $0x450] sm:$0xff] }
 0x286   : > { %2777 = vmatprep.subr.bf16.mxu0 %v2776_v58  ;;  %v2792_v56 = vpack.c.bf16 %v1802_v52, %v1793_v50  ;;  %v1792_v58 = vld [vmem:[#allocation8 + $0x400] sm:$0xff]  ;;  %v1686_v52 = vld [vmem:[#allocation8 + $0xb0] sm:$0xff] }
 0x287   : > { %2759 = vmatpush1.bf16.msra.mxu1 %v2758_v45  ;;  %v2794_v60 = vpack.c.bf16 %v1801_v59, %v1792_v58  ;;  %v1696_v45 = vld [vmem:[#allocation8 + $0x100] sm:$0xff]  ;;  %v1697_v59 = vld [vmem:[#allocation8 + $0x108] sm:$0xff] }
 0x288   : > { %2761 = vmatprep.subr.bf16.mxu1 %v2760_v51  ;;  %v1688_v58 = vld [vmem:[#allocation8 + $0xc0] sm:$0xff] }
 0x289   : > { %2779 = vmatpush1.bf16.msra.mxu0 %v2778_v5  ;;  %v2828_v5 = vpack.c.bf16 %v1680_v4, %v1671_v2  ;;  %v1716_v2 = vld [vmem:[#allocation8 + $0x1a0] sm:$0xff]  ;;  %v2834_v4 = vpack.c.bf16 %v1697_v59, %v1688_v58  ;;  %v1786_v58 = vld [vmem:[#allocation8 + $0x3d0] sm:$0xff]  ;;  %v1779_v59 = vld [vmem:[#allocation8 + $0x398] sm:$0xff] }
 0x28a   : > { %2781 = vmatprep.subr.bf16.mxu0 %v2780_v12 }
 0x28b   : > { %2763 = vmatpush1.bf16.msra.mxu1 %v2762_v57 }
 0x28c   : > { %2797 = vmatprep.subr.bf16.mxu1 %v2796_v3  ;;  %v2802_v3 = vpack.c.bf16 %v1695_v53, %v1686_v52  ;;  %v1760_v53 = vld [vmem:[#allocation8 + $0x300] sm:$0xff] }
 0x28d   : > { %2783 = vmatpush1.bf16.msra.mxu0 %v2782_v22 }
 0x28e   : > { %2785 = vmatprep.subr.bf16.mxu0 %v2784_v27 }
 0x291   : > { %2787 = vmatpush1.bf16.msra.mxu0 %v2786_v37  ;;  %v1668_v37 = vld [vmem:[#allocation8 + $0x20] sm:$0xff] }
 0x292   : > { %2789 = vmatprep.subr.bf16.mxu0 %v2788_v42  ;;  %v1670_v42 = vld [vmem:[#allocation8 + $0x30] sm:$0xff]  ;;  %v2798_v50 = vpack.c.bf16 %v1677_v38, %v1668_v37 }
 0x293   : > { %v2830_v51 = vpack.c.bf16 %v1679_v43, %v1670_v42  ;;  %v1759_v42 = vld [vmem:[#allocation8 + $0x2f8] sm:$0xff]  ;;  %v1768_v43 = vld [vmem:[#allocation8 + $0x340] sm:$0xff] }
 0x295   : > { %2791 = vmatpush1.bf16.msra.mxu0 %v2790_v46  ;;  %v1689_v46 = vld [vmem:[#allocation8 + $0xc8] sm:$0xff] }
 0x296   : > { %2793 = vmatprep.subr.bf16.mxu0 %v2792_v56  ;;  %v2800_v56 = vpack.c.bf16 %v1696_v45, %v1687_v44  ;;  %v2832_v57 = vpack.c.bf16 %v1698_v47, %v1689_v46  ;;  %v1761_v44 = vld [vmem:[#allocation8 + $0x308] sm:$0xff]  ;;  %v1770_v45 = vld [vmem:[#allocation8 + $0x350] sm:$0xff] }
 0x297   : > { %v2848_v52 = vpack.c.bf16 %v1770_v45, %v1761_v44  ;;  %v1771_v44 = vld [vmem:[#allocation8 + $0x358] sm:$0xff] }
 0x299   : > { %2795 = vmatpush1.bf16.msra.mxu0 %v2794_v60  ;;  %v1705_v60 = vld [vmem:[#allocation8 + $0x148] sm:$0xff] }
 0x29a   : > { %2829 = vmatprep.subr.bf16.mxu0 %v2828_v5  ;;  %v1704_v5 = vld [vmem:[#allocation8 + $0x140] sm:$0xff] }
 0x30f   : > { %v1357_v7 = vpop.f32.mrb[14].mxu0  ;;  %v1428_v8 = vpop.f32.mrb[2].mxu1 }
 0x310   : > { %v1645_v9 = vmul.f32 %v1357_v7, %v3497_v19  ;;  %v1647_v10 = vmul.f32 %v1428_v8, %v3503_v33  ;;  %v1359_v12 = vpop.f32.mrb[15].mxu0  ;;  %v1430_v13 = vpop.f32.mrb[3].mxu1  ;;  %v1713_v7 = vld [vmem:[#allocation8 + $0x188] sm:$0xff]  ;;  %v2804_v8 = vpack.c.bf16 %v1714_v61, %v1705_v60  ;;  %v1788_v60 = vld [vmem:[#allocation8 + $0x3e0] sm:$0xff] }
 0x311   : > { %v1646_v14 = vmul.f32 %v1359_v12, %v3499_v25  ;;  %v1648_v16 = vmul.f32 %v1430_v13, %v3505_v40  ;;  %v1715_v12 = vld [vmem:[#allocation8 + $0x198] sm:$0xff] }
 0x312   : > { %v1654_v17 = vadd.f32 %v1645_v9, %v3517_v21  ;;  %v2836_v9 = vpack.c.bf16 %v1716_v2, %v1707_v63  ;;  %v1723_v13 = vld [vmem:[#allocation8 + $0x1d8] sm:$0xff]  ;;  %v1776_v2 = vld [vmem:[#allocation8 + $0x380] sm:$0xff] }
 0x314   : > { %v1655_v11 = vadd.f32 %v1654_v17, %v1646_v14  ;;  %v1732_v14 = vld [vmem:[#allocation8 + $0x220] sm:$0xff]  ;;  %v1734_v17 = vld [vmem:[#allocation8 + $0x230] sm:$0xff] }
 0x316   : > { %v1656_v18 = vadd.f32 %v1655_v11, %v1647_v10  ;;  %v1706_v10 = vld [vmem:[#allocation8 + $0x150] sm:$0xff]  ;;  %v2806_v11 = vpack.c.bf16 %v1713_v7, %v1704_v5  ;;  %v2852_v5 = vpack.c.bf16 %v1788_v60, %v1779_v59 }
 0x317   : > { %v1778_v7 = vld [vmem:[#allocation8 + $0x390] sm:$0xff] }
 0x318   : > { %v1657_v20 = vadd.f32 %v1656_v18, %v1648_v16  ;;  %v1725_v16 = vld [vmem:[#allocation8 + $0x1e8] sm:$0xff]  ;;  %v2838_v18 = vpack.c.bf16 %v1715_v12, %v1706_v10  ;;  %v1804_v10 = vld [vmem:[#allocation8 + $0x460] sm:$0xff] }
 0x319   : > { %v1797_v12 = vld [vmem:[#allocation8 + $0x428] sm:$0xff] }
 0x32f   : > { %v1499_v22 = vpop.f32.mrb[16].mxu0  ;;  %v1570_v23 = vpop.f32.mrb[4].mxu1 }
 0x330   : > { %v1649_v34 = vmul.f32 %v1499_v22, %v3507_v48  ;;  %v1651_v24 = vmul.f32 %v1570_v23, %v3511_v62  ;;  %v1501_v26 = vpop.f32.mrb[17].mxu0  ;;  %v1572_v27 = vpop.f32.mrb[5].mxu1  ;;  %v1731_v22 = vld [vmem:[#allocation8 + $0x218] sm:$0xff]  ;;  %v2808_v23 = vpack.c.bf16 %v1732_v14, %v1723_v13  ;;  %v1806_v13 = vld [vmem:[#allocation8 + $0x470] sm:$0xff] }
 0x331   : > { %v1650_v28 = vmul.f32 %v1501_v26, %v3509_v54  ;;  %v1652_v30 = vmul.f32 %v1572_v27, %v3513_v6  ;;  %v1733_v26 = vld [vmem:[#allocation8 + $0x228] sm:$0xff] }
 0x332   : > { %v1658_v31 = vadd.f32 %v1657_v20, %v1649_v34  ;;  %v1722_v20 = vld [vmem:[#allocation8 + $0x1d0] sm:$0xff]  ;;  %v2840_v34 = vpack.c.bf16 %v1734_v17, %v1725_v16  ;;  %v1741_v27 = vld [vmem:[#allocation8 + $0x268] sm:$0xff] }
 0x333   : > { %v1794_v17 = vld [vmem:[#allocation8 + $0x410] sm:$0xff] }
 0x334   : > { %v1659_v32 = vadd.f32 %v1658_v31, %v1650_v28  ;;  %v1750_v28 = vld [vmem:[#allocation8 + $0x2b0] sm:$0xff]  ;;  %v1752_v31 = vld [vmem:[#allocation8 + $0x2c0] sm:$0xff] }
 0x335   : > { %v2812_v37 = vpack.c.bf16 %v1750_v28, %v1741_v27  ;;  %v1681_v27 = vld [vmem:[#allocation8 + $0x88] sm:$0xff] }
 0x336   : > { %v1660_v35 = vadd.f32 %v1659_v32, %v1651_v24  ;;  %v1724_v24 = vld [vmem:[#allocation8 + $0x1e0] sm:$0xff]  ;;  %v2810_v32 = vpack.c.bf16 %v1731_v22, %v1722_v20  ;;  %v1803_v20 = vld [vmem:[#allocation8 + $0x458] sm:$0xff] }
 0x337   : > { %v1796_v22 = vld [vmem:[#allocation8 + $0x420] sm:$0xff] }
 0x338   : > { %v1661_v36 = vadd.f32 %v1660_v35, %v1652_v30  ;;  %v1743_v30 = vld [vmem:[#allocation8 + $0x278] sm:$0xff]  ;;  %v2842_v35 = vpack.c.bf16 %v1733_v26, %v1724_v24  ;;  %v1672_v26 = vld [vmem:[#allocation8 + $0x40] sm:$0xff] }
 0x339   : > { %v2844_v38 = vpack.c.bf16 %v1752_v31, %v1743_v30  ;;  %v2861_v28 = vpack.c.bf16 %v1681_v27, %v1672_v26  ;;  %v1690_v30 = vld [vmem:[#allocation8 + $0xd0] sm:$0xff]  ;;  %v1699_v31 = vld [vmem:[#allocation8 + $0x118] sm:$0xff] }
 0x34f   : > { %v1641_v21 = vpop.f32.mrb[18].mxu0 }
 0x350   : > { %v1653_v39 = vmul.f32 %v1641_v21, %v3515_v15  ;;  %v2486_v41 = vpop.f32.mrb[19].mxu0  ;;  %v1749_v21 = vld [vmem:[#allocation8 + $0x2a8] sm:$0xff] }
 0x351   : > { %v1751_v41 = vld [vmem:[#allocation8 + $0x2b8] sm:$0xff] }
 0x352   : > { %v1662_v49 = vadd.f32 %v1661_v36, %v1653_v39  ;;  %v1740_v36 = vld [vmem:[#allocation8 + $0x260] sm:$0xff]  ;;  %v1742_v39 = vld [vmem:[#allocation8 + $0x270] sm:$0xff] }
 0x353   : > { %v2814_v46 = vpack.c.bf16 %v1749_v21, %v1740_v36  ;;  %v2846_v47 = vpack.c.bf16 %v1751_v41, %v1742_v39  ;;  %v1717_v36 = vld [vmem:[#allocation8 + $0x1a8] sm:$0xff]  ;;  %v1744_v41 = vld [vmem:[#allocation8 + $0x280] sm:$0xff] }
 0x354   : > { %v3546_v55 = vmax.f32 %v1662_v49, 0.0  ;;  %v1758_v49 = vld [vmem:[#allocation8 + $0x2f0] sm:$0xff] }
 0x356   : > { %1873 = vmatmul.mubr.f32.vlgmr.msra.gmra.mrb[6].mxu1 %v3546_v55  ;;  %1944 = vmatmul.mubr.f32.vlgmr.msra.gmra.mrb[20].mxu0 %v3546_v55 }
 0x357   : > { %2799 = vmatpush1.bf16.msra.mxu1 %v2798_v50  ;;  %2831 = vmatpush1.bf16.msra.mxu0 %v2830_v51  ;;  %v1767_v50 = vld [vmem:[#allocation8 + $0x338] sm:$0xff]  ;;  %v2816_v51 = vpack.c.bf16 %v1768_v43, %v1759_v42  ;;  %v1753_v42 = vld [vmem:[#allocation8 + $0x2c8] sm:$0xff] }
 0x358   : > { %2801 = vmatprep.subr.bf16.mxu1 %v2800_v56  ;;  %2833 = vmatprep.subr.bf16.mxu0 %v2832_v57  ;;  %v1769_v56 = vld [vmem:[#allocation8 + $0x348] sm:$0xff]  ;;  %v2818_v61 = vpack.c.bf16 %v1767_v50, %v1758_v49  ;;  %v2873_v43 = vpack.c.bf16 %v1753_v42, %v1744_v41  ;;  %v1798_v50 = vld [vmem:[#allocation8 + $0x430] sm:$0xff] }
 0x359   : > { %2014 = vmatprep.mubr.f32.mxu1 %v3174_v0  ;;  %2085 = vmatprep.mubr.f32.mxu0 %v3174_v0  ;;  %v1777_v57 = vld [vmem:[#allocation8 + $0x388] sm:$0xff]  ;;  %v2850_v63 = vpack.c.bf16 %v1769_v56, %v1760_v53 }
 0x35b   : > { %2803 = vmatpush1.bf16.msra.mxu1 %v2802_v3  ;;  %2835 = vmatpush1.bf16.msra.mxu0 %v2834_v4  ;;  %v1785_v3 = vld [vmem:[#allocation8 + $0x3c8] sm:$0xff]  ;;  %v2820_v4 = vpack.c.bf16 %v1786_v58, %v1777_v57 }
 0x35c   : > { %2805 = vmatprep.subr.bf16.mxu1 %v2804_v8  ;;  %2837 = vmatprep.subr.bf16.mxu0 %v2836_v9  ;;  %v1787_v8 = vld [vmem:[#allocation8 + $0x3d8] sm:$0xff]  ;;  %v2822_v14 = vpack.c.bf16 %v1785_v3, %v1776_v2 }
 0x35d   : > { %v1795_v9 = vld [vmem:[#allocation8 + $0x418] sm:$0xff]  ;;  %v2854_v16 = vpack.c.bf16 %v1787_v8, %v1778_v7 }
 0x35f   : > { %2807 = vmatpush1.bf16.msra.mxu1 %v2806_v11  ;;  %2839 = vmatpush1.bf16.msra.mxu0 %v2838_v18  ;;  %v2824_v11 = vpack.c.bf16 %v1804_v10, %v1795_v9  ;;  %v2856_v18 = vpack.c.bf16 %v1806_v13, %v1797_v12 }
 0x360   : > { %2809 = vmatprep.subr.bf16.mxu1 %v2808_v23  ;;  %2841 = vmatprep.subr.bf16.mxu0 %v2840_v34  ;;  %v1805_v23 = vld [vmem:[#allocation8 + $0x468] sm:$0xff]  ;;  %v2826_v34 = vpack.c.bf16 %v1803_v20, %v1794_v17 }
 0x361   : > { %v2858_v24 = vpack.c.bf16 %v1805_v23, %v1796_v22 }
 0x363   : > { %2811 = vmatpush1.bf16.msra.mxu1 %v2810_v32  ;;  %2843 = vmatpush1.bf16.msra.mxu0 %v2842_v35  ;;  %v2864_v32 = vpack.c.bf16 %v1699_v31, %v1690_v30  ;;  %v1708_v35 = vld [vmem:[#allocation8 + $0x160] sm:$0xff] }
 0x364   : > { %2813 = vmatprep.subr.bf16.mxu1 %v2812_v37  ;;  %2845 = vmatprep.subr.bf16.mxu0 %v2844_v38  ;;  %v2867_v21 = vpack.c.bf16 %v1717_v36, %v1708_v35  ;;  %v1726_v37 = vld [vmem:[#allocation8 + $0x1f0] sm:$0xff]  ;;  %v1735_v38 = vld [vmem:[#allocation8 + $0x238] sm:$0xff] }
 0x365   : > { %v2870_v39 = vpack.c.bf16 %v1735_v38, %v1726_v37 }
 0x367   : > { %2815 = vmatpush1.bf16.msra.mxu1 %v2814_v46  ;;  %2847 = vmatpush1.bf16.msra.mxu0 %v2846_v47  ;;  %v1780_v46 = vld [vmem:[#allocation8 + $0x3a0] sm:$0xff]  ;;  %v1789_v47 = vld [vmem:[#allocation8 + $0x3e8] sm:$0xff] }
 0x368   : > { %2817 = vmatprep.subr.bf16.mxu1 %v2816_v51  ;;  %2849 = vmatprep.subr.bf16.mxu0 %v2848_v52  ;;  %v2879_v49 = vpack.c.bf16 %v1789_v47, %v1780_v46  ;;  %v1807_v51 = vld [vmem:[#allocation8 + $0x478] sm:$0xff] }
 0x369   : > { %v2882_v52 = vpack.c.bf16 %v1807_v51, %v1798_v50 }
 0x36b   : > { %2819 = vmatpush1.bf16.msra.mxu1 %v2818_v61  ;;  %2851 = vmatpush1.bf16.msra.mxu0 %v2850_v63 }
 0x36c   : > { %2821 = vmatprep.subr.bf16.mxu1 %v2820_v4  ;;  %2853 = vmatprep.subr.bf16.mxu0 %v2852_v5 }
 0x36f   : > { %2823 = vmatpush1.bf16.msra.mxu1 %v2822_v14  ;;  %2855 = vmatpush1.bf16.msra.mxu0 %v2854_v16 }
 0x370   : > { %2825 = vmatprep.subr.bf16.mxu1 %v2824_v11  ;;  %2857 = vmatprep.subr.bf16.mxu0 %v2856_v18 }
 0x373   : > { %2827 = vmatpush1.bf16.msra.mxu1 %v2826_v34  ;;  %2859 = vmatpush1.bf16.msra.mxu0 %v2858_v24 }
 0x374   : > { %2860 = vmatprep.subr.bf16.mxu1 %v3176_v1 }
 0x376   : > { %2015 = vmatmul.mubr.f32.vlgmr.msra.gmra.mrb[8].mxu1 %v3546_v55  ;;  %2086 = vmatmul.mubr.f32.vlgmr.msra.gmra.mrb[22].mxu0 %v3546_v55 }
 0x377   : > { %2862 = vmatpush3.bf16.msra.mxu1 %v2861_v28  ;;  %2519 = vmatprep.mubr.msk.f32.mxu1 %vm3175_vm0, %v3174_v0  ;;  %v1762_v0 = vld [vmem:[#allocation8 + $0x310] sm:$0xff] }
 0x378   : > { %2863 = vmatprep.subr.bf16.mxu1 %v3176_v1  ;;  %v2876_v45 = vpack.c.bf16 %v1771_v44, %v1762_v0 }
 0x37b   : > { %2865 = vmatpush3.bf16.msra.mxu1 %v2864_v32 }
 0x37c   : > { %2866 = vmatprep.subr.bf16.mxu1 %v3176_v1 }
 0x37f   : > { %2868 = vmatpush3.bf16.msra.mxu1 %v2867_v21 }
 0x380   : > { %2869 = vmatprep.subr.bf16.mxu1 %v3176_v1 }
 0x383   : > { %2871 = vmatpush3.bf16.msra.mxu1 %v2870_v39 }
 0x384   : > { %2872 = vmatprep.subr.bf16.mxu1 %v3176_v1 }
 0x387   : > { %2874 = vmatpush3.bf16.msra.mxu1 %v2873_v43 }
 0x388   : > { %2875 = vmatprep.subr.bf16.mxu1 %v3176_v1 }
 0x38b   : > { %2877 = vmatpush3.bf16.msra.mxu1 %v2876_v45 }
 0x38c   : > { %2878 = vmatprep.subr.bf16.mxu1 %v3176_v1 }
 0x38f   : > { %2880 = vmatpush3.bf16.msra.mxu1 %v2879_v49 }
 0x390   : > { %2881 = vmatprep.subr.bf16.mxu1 %v3176_v1 }
 0x393   : > { %2883 = vmatpush3.bf16.msra.mxu1 %v2882_v52 }
 0x396   : > { %2520 = vmatmul.mubr.f32.vlgmr.msra.gmra.mrb[10].mxu1 %v3546_v55 }
 0x429   : > { %v1874_v53 = vpop.f32.mrb[6].mxu1  ;;  %v1945_v56 = vpop.f32.mrb[20].mxu0 }
 0x42a   : > { %v2162_v57 = vmul.f32 %v1874_v53, %v3497_v19  ;;  %v2164_v58 = vmul.f32 %v1945_v56, %v3503_v33  ;;  %v1876_v59 = vpop.f32.mrb[7].mxu1  ;;  %v1947_v60 = vpop.f32.mrb[21].mxu0 }
 0x42b   : > { %v2163_v61 = vmul.f32 %v1876_v59, %v3499_v25  ;;  %v2165_v63 = vmul.f32 %v1947_v60, %v3505_v40 }
 0x42c   : > { %v2171_v2 = vadd.f32 %v2162_v57, %v3519_v29 }
 0x42e   : > { %v2172_v3 = vadd.f32 %v2171_v2, %v2163_v61 }
 0x430   : > { %v2173_v1 = vadd.f32 %v2172_v3, %v2164_v58 }
 0x432   : > { %v2174_v4 = vadd.f32 %v2173_v1, %v2165_v63 }
 0x449   : > { %v2016_v55 = vpop.f32.mrb[8].mxu1  ;;  %v2087_v5 = vpop.f32.mrb[22].mxu0 }
 0x44a   : > { %v2166_v7 = vmul.f32 %v2016_v55, %v3507_v48  ;;  %v2168_v19 = vmul.f32 %v2087_v5, %v3511_v62  ;;  %v2018_v33 = vpop.f32.mrb[9].mxu1  ;;  %v2089_v8 = vpop.f32.mrb[23].mxu0 }
 0x44b   : > { %v2167_v9 = vmul.f32 %v2018_v33, %v3509_v54  ;;  %v2169_v25 = vmul.f32 %v2089_v8, %v3513_v6 }
 0x44c   : > { %v2175_v40 = vadd.f32 %v2174_v4, %v2166_v7 }
 0x44e   : > { %v2176_v10 = vadd.f32 %v2175_v40, %v2167_v9 }
 0x450   : > { %v2177_v29 = vadd.f32 %v2176_v10, %v2168_v19 }
 0x452   : > { %v2178_v12 = vadd.f32 %v2177_v29, %v2169_v25 }
 0x469   : > { %v2158_v13 = vpop.f32.mrb[10].mxu1 }
 0x46a   : > { %v2170_v48 = vmul.f32 %v2158_v13, %v3515_v15  ;;  %v2521_v62 = vpop.f32.mrb[11].mxu1 }
 0x46c   : > { %v2179_v14 = vadd.f32 %v2178_v12, %v2170_v48 }
 0x46e   : > { %2180 = vst [vmem:[%s449_s20] sm:$0xff] %v2179_v14 }
 0x46f   : > { %3101 = shalt.err (!%p3098_p5)
}
 0x470   : > { %s3102_s15 = scalar_lea.hbm %s3580_s24, 128  ;;  %s3106_s23 = scalar_lea.hbm %s3633_s11, 384 }
 0x471   : > { %p3103_p0 = scmp.ne.s32.totalorder %s3580_s24, %s3102_s15  ;;  %p3107_p10 = scmp.lt.u32.totalorder %s3580_s24, %s3633_s11 }
 0x472   : > { %p3108_p12 = scmp.lt.u32.totalorder %s3106_s23, %s3102_s15  ;;  %p3110_p2 = scmp.lt.u32.totalorder %s3102_s15, %s3580_s24 }
 0x473   : > { %p3104_p6 = pnand %p3103_p0, %p3665_p3 }
 0x474   : > { %p3109_p1 = por %p3108_p12, %p3107_p10 }
 0x475   : > { %p3105_p9 = pneg %p3104_p6 }
 0x476   : > { %p3111_p4 = por %p3110_p2, %p3109_p1 }
 0x478   : > { %p3112_p7 = pnand %p3111_p4, %p3105_p9 }
 0x47a   : > { %3115 = shalt.err (!%p3112_p7)
}
 0x47b   : > { %2900 = dma.vmem_to_hbm [thread:$0]  (%p3665_p3), %s3582_s28, 128, %s3580_s24, %s2182_s25  }
 0x47c PF: > { %s3666_s30 = sld [smem:[#allocation17_spill]]  ;;  %s3667_s17 = sld [smem:[#allocation15_spill]] }
 0x47d   : > { %s3668_s20 = sld [smem:[#allocation20_spill]] }
 0x482   : > { %p2927_p8 = scmp.ge.s32.totalorder %s3666_s30, 2  ;;  %s2207_s26 = sand.u32 1, %s3667_s17  }
 0x483   : > { %p3669_p11 = scmp.ne.s32.totalorder %s3668_s20, 0  ;;  %s2208_s19 = scalar_lea.sflag [#allocation4], %s2207_s26 }
 0x485   : > { %p2916_p13 = pnand %p2927_p8, %p3669_p11 }
 0x487   : > { %3145 = dma.done.wait (!%p2916_p13), %s2208_s19, 128  }
 0x488   : > { %3147 = vsyncadd (!%p2916_p13), %s2208_s19, 4294967168  ;;  %s3670_s20 = sld [smem:[#allocation18_spill]]  ;;  %s3671_s14 = sld [smem:[#allocation16_spill]] }
 0x489   : > { %s3672_s19 = sld [smem:[#allocation19_spill]]  ;;  %s3673_s17 = smov %s3154_s18 }
 0x48e   : > { %p24_p5 = scmp.ge.s32.totalorder %s3670_s20, 5   ;;  %s3674_s18 = smov %s3671_s14 }
 0x490   :  { %26 = sbr.rel (!%p24_p5) target bundleno = 8 (0x8), region = 119 }
 0x497   :  { %2213 = vsyncpa [#allocation3], 1 }
 0x498   :  { %2215 = vsyncpa [#allocation3 + $0x1], 1 }
 0x499   :  { %2216 = vsyncpa [#allocation6], 1 }
 0x49a   :  { %2217 = vsyncpa [#allocation9], 1 }
 0x49b   :  { %2218 = vsyncpa [#allocation4], 1 }
 0x49c   :  { %2220 = vsyncpa [#allocation4 + $0x1], 1 }

</bundles_post_ra>
